<compile_context>
chip_gen: v7x
topology: tpu7x:2x2x1
jax: 0.10.0
libtpu: 0.0.40
codegen_flags: <defaults>
</compile_context>

<pallas_src>
import functools

import numpy as np
import jax
import jax.numpy as jnp
from jax.experimental import pallas as pl
from jax.experimental.pallas import tpu as pltpu


# ----------------------------------------------------------------------------
# Fused Pallas kernel: per-token TT row reconstruction (no full table).
# ----------------------------------------------------------------------------
def _tt_rows_kernel(idx_ref, hexp_ref, texp_ref, out_ref, *, rank):
    """Computes a (TN, emb) tile of embedding rows.

    Math (head/tail split of the TT contraction):
      row[t, p*e_tail + q] = sum_r HEAD[h(t), p, r] * TAIL[r, i_d(t), q]
    with h(t) = token // v_tail, i_d(t) = token % v_tail.

      idx_ref : (TN, 3) int32 -> [head index, tail digit, valid flag]
      hexp_ref: (v_head, rank*emb)  lane-expanded head factor (rank-major)
      texp_ref: (v_tail, rank*emb)  lane-expanded last TT core (rank-major)
    """
    tn, emb = out_ref.shape
    v_head = hexp_ref.shape[0]
    v_tail = texp_ref.shape[0]

    h = idx_ref[:, 0:1]                                    # (TN, 1)
    td = idx_ref[:, 1:2]                                   # (TN, 1)
    valid = idx_ref[:, 2:3].astype(jnp.float32)            # (TN, 1) 0/1 mask

    # One-hot selection matrices (MXU-friendly gather).  Invalid / padding_idx
    # tokens get an all-zero row, matching torch.where semantics.
    oh_h = (jax.lax.broadcasted_iota(jnp.int32, (tn, v_head), 1) == h)
    oh_h = oh_h.astype(jnp.float32) * valid                # (TN, v_head)
    oh_t = (jax.lax.broadcasted_iota(jnp.int32, (tn, v_tail), 1) == td)
    oh_t = oh_t.astype(jnp.float32)                        # (TN, v_tail)

    acc = jnp.zeros((tn, emb), jnp.float32)
    # Static unroll over the TT rank (small, e.g. 8).  Per r:
    #   L_r[t, p*e_tail+q] = HEAD[h(t), p, r]   (gather matmul, emb-wide)
    #   T_r[t, p*e_tail+q] = TAIL[r, i_d(t), q] (gather matmul, emb-wide)
    #   acc += L_r * T_r                         (VPU FMA)
    # Ref slices are 128-lane aligned (multiples of emb=128); all dots are 2-D
    # with full lane-width outputs, so the MXU sees only large, aligned tiles.
    for r in range(rank):
        hr = hexp_ref[:, r * emb:(r + 1) * emb]            # (v_head, emb)
        tr = texp_ref[:, r * emb:(r + 1) * emb]            # (v_tail, emb)
        acc = acc + (jnp.dot(oh_h, hr, preferred_element_type=jnp.float32) *
                     jnp.dot(oh_t, tr, preferred_element_type=jnp.float32))

    out_ref[...] = acc


def tt_embedding_rows(idx, hexp, texp, *, emb_size, rank, token_tile):
    """Fused lookup: (n_pad, 3) int32 indices -> (n_pad, emb) f32 rows."""
    n_pad = idx.shape[0]
    v_head, w_h = hexp.shape
    v_tail, w_t = texp.shape
    assert w_h == rank * emb_size and w_t == rank * emb_size
    assert n_pad % token_tile == 0

    kernel = functools.partial(_tt_rows_kernel, rank=rank)
    return pl.pallas_call(
        kernel,
        out_shape=jax.ShapeDtypeStruct((n_pad, emb_size), jnp.float32),
        grid=(n_pad // token_tile,),
        in_specs=[
            pl.BlockSpec((token_tile, 3), lambda i: (i, 0)),
            # Small lane-expanded TT factors: full blocks, constant block index
            # -> VMEM resident across all grid steps (no re-DMA).
            pl.BlockSpec((v_head, rank * emb_size), lambda i: (0, 0)),
            pl.BlockSpec((v_tail, rank * emb_size), lambda i: (0, 0)),
        ],
        out_specs=pl.BlockSpec((token_tile, emb_size), lambda i: (i, 0)),
        compiler_params=pltpu.CompilerParams(
            dimension_semantics=("parallel",)),   # token tiles across TCs
    )(idx, hexp, texp)


# ----------------------------------------------------------------------------
# TTEmbedding module (parameters + forward wrapper)
# ----------------------------------------------------------------------------
class TTEmbeddingPallas:
    """JAX/Pallas port of t3nsor TTEmbedding (d TT cores, internal tt_rank)."""

    def __init__(self, shape, tt_rank=8, padding_idx=None, key=None,
                 token_tile=128):
        self.voc_quant = list(shape[0])
        self.emb_quant = list(shape[1])
        self.d = len(self.voc_quant)
        assert self.d >= 2
        self.ranks = [1] + [tt_rank] * (self.d - 1) + [1]
        self.voc_size = int(np.prod(self.voc_quant))
        self.emb_size = int(np.prod(self.emb_quant))
        self.padding_idx = padding_idx
        self.token_tile = token_tile            # 128-256 keeps MXU rows full

        # Head/tail split of the token index (last TT mode is the "tail").
        self.v_head = int(np.prod(self.voc_quant[:-1]))
        self.e_head = int(np.prod(self.emb_quant[:-1]))
        self.v_tail = int(self.voc_quant[-1])
        self.e_tail = int(self.emb_quant[-1])
        self.rank = self.ranks[self.d - 1]

        # Deterministic glorot-style init of the TT cores (synthetic params,
        # core shapes (r_{k-1}, i_k, j_k, r_k) as in t3.glorot_initializer).
        var_goal = 2.0 / (self.voc_size + self.emb_size)
        core_std = (var_goal ** (0.5 / self.d)) / (
            tt_rank ** ((self.d - 1) / (2.0 * self.d)))
        keys = jax.random.split(key, self.d)
        self.cores = []
        for k in range(self.d):
            cshape = (self.ranks[k], self.voc_quant[k],
                      self.emb_quant[k], self.ranks[k + 1])
            self.cores.append(
                core_std * jax.random.normal(keys[k], cshape, jnp.float32))

    # -- lane-expanded head/tail TT factors ------------------------------------
    def _expanded_factors(self):
        """Hexp (v_head, rank*emb) and Texp (v_tail, rank*emb), rank-major.

        These are tiny (O((voc*emb)^{(d-1)/d} * rank)) compared with the full
        (voc, emb) table, so the small chain contraction + repeat/tile stays
        as a few cheap XLA ops here; all per-token work runs in the fused
        Pallas kernel (no (voc, emb) table, no full-table HBM transpose).
        """
        d, ranks = self.d, self.ranks
        res = self.cores[0]                                # (1, v1, e1, r1)
        for k in range(1, d - 1):
            res = jnp.dot(res.reshape(-1, ranks[k]),
                          self.cores[k].reshape(ranks[k], -1))
        inter = []
        for k in range(d - 1):
            inter += [self.voc_quant[k], self.emb_quant[k]]
        inter += [ranks[d - 1]]
        res = res.reshape(inter)             # (v1,e1,...,v_{d-1},e_{d-1},R)
        perm = (list(range(0, 2 * (d - 1), 2)) +
                list(range(1, 2 * (d - 1), 2)) + [2 * (d - 1)])
        head = jnp.transpose(res, perm).reshape(self.v_head, self.e_head,
                                                self.rank)
        # Hexp[h, r, p*e_tail+q] = head[h, p, r]
        hexp = jnp.repeat(jnp.transpose(head, (0, 2, 1)),
                          self.e_tail, axis=-1)
        hexp = hexp.reshape(self.v_head, self.rank * self.emb_size)
        tail = self.cores[d - 1][..., 0]                   # (R, v_d, e_d)
        # Texp[v, r, p*e_tail+q] = tail[r, v, q]
        texp = jnp.tile(jnp.transpose(tail, (1, 0, 2)), (1, 1, self.e_head))
        texp = texp.reshape(self.v_tail, self.rank * self.emb_size)
        return hexp, texp

    # -- forward ---------------------------------------------------------------
    def __call__(self, x):
        xshape = list(x.shape)
        x_flat = x.reshape(-1).astype(jnp.int32)
        n = x_flat.shape[0]
        tn = self.token_tile
        n_pad = -(-n // tn) * tn

        head_idx = x_flat // self.v_tail
        tail_idx = x_flat % self.v_tail
        if self.padding_idx is not None:
            valid = (x_flat != self.padding_idx).astype(jnp.int32)
        else:
            valid = jnp.ones_like(x_flat)
        idx = jnp.stack([head_idx, tail_idx, valid], axis=1)      # (n, 3) i32
        if n_pad != n:
            idx = jnp.concatenate(
                [idx, jnp.zeros((n_pad - n, 3), jnp.int32)], axis=0)

        hexp, texp = self._expanded_factors()
        rows = tt_embedding_rows(idx, hexp, texp, emb_size=self.emb_size,
                                 rank=self.rank, token_tile=tn)
        return rows[:n].reshape(xshape + [self.emb_size])


# ----------------------------------------------------------------------------
# Pure-JAX reference (original full-table semantics, for correctness check)
# ----------------------------------------------------------------------------
def reference_forward(emb, x):
    d = emb.d
    res = emb.cores[0]
    for k in range(1, d):
        res = jnp.dot(res.reshape(-1, emb.ranks[k]),
                      emb.cores[k].reshape(emb.ranks[k], -1))
    inter = []
    for k in range(d):
        inter += [emb.voc_quant[k], emb.emb_quant[k]]
    perm = list(range(0, 2 * d, 2)) + list(range(1, 2 * d, 2))
    full = jnp.transpose(res.reshape(inter), perm).reshape(
        emb.voc_size, emb.emb_size)
    x_flat = x.reshape(-1)
    rows = full[x_flat]
    if emb.padding_idx is not None:
        rows = jnp.where(x_flat.reshape(-1, 1) != emb.padding_idx,
                         rows, jnp.zeros_like(rows))
    return rows.reshape(list(x.shape) + [emb.emb_size])


# ----------------------------------------------------------------------------
if __name__ == "__main__":
    key = jax.random.PRNGKey(0)
    k_cores, k_x = jax.random.split(key)

    # shape = [voc_quantization, emb_quantization], d=3, tt_rank=8
    # -> voc_size = 4*5*6 = 120, emb_size = 4*4*8 = 128 (lane-dense output).
    shape = [[4, 5, 6], [4, 4, 8]]
    emb = TTEmbeddingPallas(shape, tt_rank=8, padding_idx=0, key=k_cores,
                            token_tile=128)

    # Token ids of shape (batch=2, seq=8); one padding token to exercise masking.
    x = jax.random.randint(k_x, (2, 8), 0, emb.voc_size, dtype=jnp.int32)
    x = x.at[0, 0].set(0)

    out = jax.block_until_ready(emb(x))
    ref = jax.block_until_ready(reference_forward(emb, x))

    assert out.shape == (2, 8, emb.emb_size), out.shape
    assert out.dtype == jnp.float32
    if not jnp.allclose(out, ref, rtol=1e-5, atol=1e-5):
        err = float(jnp.max(jnp.abs(out - ref)))
        raise AssertionError(
            f"Pallas TTEmbedding mismatch vs reference (max abs err {err})")

    print("KERNEL_OK")
</pallas_src>

<mosaic_0001>
module attributes {stable_mosaic.version = 11 : i64} {
  func.func @_tt_rows_kernel(%arg0: i32, %arg1: memref<128x3xi32, #tpu.memory_space<vmem>>, %arg2: memref<20x1024xf32, #tpu.memory_space<vmem>>, %arg3: memref<6x1024xf32, #tpu.memory_space<vmem>>, %arg4: memref<128x128xf32, #tpu.memory_space<vmem>>) attributes {dimension_semantics = [#tpu.dimension_semantics<parallel>], iteration_bounds = array<i64: 1>, scalar_prefetch = 0 : i64, scratch_operands = 0 : i64, tpu.core_type = #tpu.core_type<tc>, window_params = [{transform_indices = @transform_0, window_bounds = array<i64: 128, 3>}, {pipeline_mode = #tpu.pipeline_mode<synchronous>, transform_indices = @transform_1, window_bounds = array<i64: 20, 1024>}, {pipeline_mode = #tpu.pipeline_mode<synchronous>, transform_indices = @transform_2, window_bounds = array<i64: 6, 1024>}, {transform_indices = @transform_3, window_bounds = array<i64: 128, 128>}]} {
    %c0 = arith.constant 0 : index
    %c0_0 = arith.constant 0 : index
    %0 = vector.load %arg1[%c0, %c0_0] : memref<128x3xi32, #tpu.memory_space<vmem>>, vector<128x1xi32>
    %c0_1 = arith.constant 0 : index
    %c1 = arith.constant 1 : index
    %1 = vector.load %arg1[%c0_1, %c1] : memref<128x3xi32, #tpu.memory_space<vmem>>, vector<128x1xi32>
    %c0_2 = arith.constant 0 : index
    %c2 = arith.constant 2 : index
    %2 = vector.load %arg1[%c0_2, %c2] : memref<128x3xi32, #tpu.memory_space<vmem>>, vector<128x1xi32>
    %3 = arith.sitofp %2 : vector<128x1xi32> to vector<128x1xf32>
    %4 = tpu.iota {dimensions = array<i32: 1>} : vector<128x20xi32>
    %5 = vector.broadcast %0 : vector<128x1xi32> to vector<128x20xi32>
    %6 = arith.cmpi eq, %4, %5 : vector<128x20xi32>
    %7 = arith.extui %6 : vector<128x20xi1> to vector<128x20xi32>
    %8 = arith.sitofp %7 : vector<128x20xi32> to vector<128x20xf32>
    %9 = vector.broadcast %3 : vector<128x1xf32> to vector<128x20xf32>
    %10 = arith.mulf %8, %9 : vector<128x20xf32>
    %11 = tpu.iota {dimensions = array<i32: 1>} : vector<128x6xi32>
    %12 = vector.broadcast %1 : vector<128x1xi32> to vector<128x6xi32>
    %13 = arith.cmpi eq, %11, %12 : vector<128x6xi32>
    %14 = arith.extui %13 : vector<128x6xi1> to vector<128x6xi32>
    %15 = arith.sitofp %14 : vector<128x6xi32> to vector<128x6xf32>
    %cst = arith.constant 0.000000e+00 : f32
    %16 = vector.broadcast %cst : f32 to vector<128x128xf32>
    %c0_3 = arith.constant 0 : index
    %c0_4 = arith.constant 0 : index
    %17 = vector.load %arg2[%c0_3, %c0_4] : memref<20x1024xf32, #tpu.memory_space<vmem>>, vector<20x128xf32>
    %c0_5 = arith.constant 0 : index
    %c0_6 = arith.constant 0 : index
    %18 = vector.load %arg3[%c0_5, %c0_6] : memref<6x1024xf32, #tpu.memory_space<vmem>>, vector<6x128xf32>
    %cst_7 = arith.constant dense<0.000000e+00> : vector<128x128xf32>
    %19 = tpu.matmul %10, %17, %cst_7 {dimension_numbers = #tpu.dot_dimension_numbers<[1], [0], [0], [1], [0, 0, 1, 1], [], []>} : vector<128x20xf32>, vector<20x128xf32>, vector<128x128xf32> -> vector<128x128xf32>
    %cst_8 = arith.constant dense<0.000000e+00> : vector<128x128xf32>
    %20 = tpu.matmul %15, %18, %cst_8 {dimension_numbers = #tpu.dot_dimension_numbers<[1], [0], [0], [1], [0, 0, 1, 1], [], []>} : vector<128x6xf32>, vector<6x128xf32>, vector<128x128xf32> -> vector<128x128xf32>
    %21 = arith.mulf %19, %20 : vector<128x128xf32>
    %22 = arith.addf %16, %21 : vector<128x128xf32>
    %c0_9 = arith.constant 0 : index
    %c128 = arith.constant 128 : index
    %23 = vector.load %arg2[%c0_9, %c128] : memref<20x1024xf32, #tpu.memory_space<vmem>>, vector<20x128xf32>
    %c0_10 = arith.constant 0 : index
    %c128_11 = arith.constant 128 : index
    %24 = vector.load %arg3[%c0_10, %c128_11] : memref<6x1024xf32, #tpu.memory_space<vmem>>, vector<6x128xf32>
    %cst_12 = arith.constant dense<0.000000e+00> : vector<128x128xf32>
    %25 = tpu.matmul %10, %23, %cst_12 {dimension_numbers = #tpu.dot_dimension_numbers<[1], [0], [0], [1], [0, 0, 1, 1], [], []>} : vector<128x20xf32>, vector<20x128xf32>, vector<128x128xf32> -> vector<128x128xf32>
    %cst_13 = arith.constant dense<0.000000e+00> : vector<128x128xf32>
    %26 = tpu.matmul %15, %24, %cst_13 {dimension_numbers = #tpu.dot_dimension_numbers<[1], [0], [0], [1], [0, 0, 1, 1], [], []>} : vector<128x6xf32>, vector<6x128xf32>, vector<128x128xf32> -> vector<128x128xf32>
    %27 = arith.mulf %25, %26 : vector<128x128xf32>
    %28 = arith.addf %22, %27 : vector<128x128xf32>
    %c0_14 = arith.constant 0 : index
    %c256 = arith.constant 256 : index
    %29 = vector.load %arg2[%c0_14, %c256] : memref<20x1024xf32, #tpu.memory_space<vmem>>, vector<20x128xf32>
    %c0_15 = arith.constant 0 : index
    %c256_16 = arith.constant 256 : index
    %30 = vector.load %arg3[%c0_15, %c256_16] : memref<6x1024xf32, #tpu.memory_space<vmem>>, vector<6x128xf32>
    %cst_17 = arith.constant dense<0.000000e+00> : vector<128x128xf32>
    %31 = tpu.matmul %10, %29, %cst_17 {dimension_numbers = #tpu.dot_dimension_numbers<[1], [0], [0], [1], [0, 0, 1, 1], [], []>} : vector<128x20xf32>, vector<20x128xf32>, vector<128x128xf32> -> vector<128x128xf32>
    %cst_18 = arith.constant dense<0.000000e+00> : vector<128x128xf32>
    %32 = tpu.matmul %15, %30, %cst_18 {dimension_numbers = #tpu.dot_dimension_numbers<[1], [0], [0], [1], [0, 0, 1, 1], [], []>} : vector<128x6xf32>, vector<6x128xf32>, vector<128x128xf32> -> vector<128x128xf32>
    %33 = arith.mulf %31, %32 : vector<128x128xf32>
    %34 = arith.addf %28, %33 : vector<128x128xf32>
    %c0_19 = arith.constant 0 : index
    %c384 = arith.constant 384 : index
    %35 = vector.load %arg2[%c0_19, %c384] : memref<20x1024xf32, #tpu.memory_space<vmem>>, vector<20x128xf32>
    %c0_20 = arith.constant 0 : index
    %c384_21 = arith.constant 384 : index
    %36 = vector.load %arg3[%c0_20, %c384_21] : memref<6x1024xf32, #tpu.memory_space<vmem>>, vector<6x128xf32>
    %cst_22 = arith.constant dense<0.000000e+00> : vector<128x128xf32>
    %37 = tpu.matmul %10, %35, %cst_22 {dimension_numbers = #tpu.dot_dimension_numbers<[1], [0], [0], [1], [0, 0, 1, 1], [], []>} : vector<128x20xf32>, vector<20x128xf32>, vector<128x128xf32> -> vector<128x128xf32>
    %cst_23 = arith.constant dense<0.000000e+00> : vector<128x128xf32>
    %38 = tpu.matmul %15, %36, %cst_23 {dimension_numbers = #tpu.dot_dimension_numbers<[1], [0], [0], [1], [0, 0, 1, 1], [], []>} : vector<128x6xf32>, vector<6x128xf32>, vector<128x128xf32> -> vector<128x128xf32>
    %39 = arith.mulf %37, %38 : vector<128x128xf32>
    %40 = arith.addf %34, %39 : vector<128x128xf32>
    %c0_24 = arith.constant 0 : index
    %c512 = arith.constant 512 : index
    %41 = vector.load %arg2[%c0_24, %c512] : memref<20x1024xf32, #tpu.memory_space<vmem>>, vector<20x128xf32>
    %c0_25 = arith.constant 0 : index
    %c512_26 = arith.constant 512 : index
    %42 = vector.load %arg3[%c0_25, %c512_26] : memref<6x1024xf32, #tpu.memory_space<vmem>>, vector<6x128xf32>
    %cst_27 = arith.constant dense<0.000000e+00> : vector<128x128xf32>
    %43 = tpu.matmul %10, %41, %cst_27 {dimension_numbers = #tpu.dot_dimension_numbers<[1], [0], [0], [1], [0, 0, 1, 1], [], []>} : vector<128x20xf32>, vector<20x128xf32>, vector<128x128xf32> -> vector<128x128xf32>
    %cst_28 = arith.constant dense<0.000000e+00> : vector<128x128xf32>
    %44 = tpu.matmul %15, %42, %cst_28 {dimension_numbers = #tpu.dot_dimension_numbers<[1], [0], [0], [1], [0, 0, 1, 1], [], []>} : vector<128x6xf32>, vector<6x128xf32>, vector<128x128xf32> -> vector<128x128xf32>
    %45 = arith.mulf %43, %44 : vector<128x128xf32>
    %46 = arith.addf %40, %45 : vector<128x128xf32>
    %c0_29 = arith.constant 0 : index
    %c640 = arith.constant 640 : index
    %47 = vector.load %arg2[%c0_29, %c640] : memref<20x1024xf32, #tpu.memory_space<vmem>>, vector<20x128xf32>
    %c0_30 = arith.constant 0 : index
    %c640_31 = arith.constant 640 : index
    %48 = vector.load %arg3[%c0_30, %c640_31] : memref<6x1024xf32, #tpu.memory_space<vmem>>, vector<6x128xf32>
    %cst_32 = arith.constant dense<0.000000e+00> : vector<128x128xf32>
    %49 = tpu.matmul %10, %47, %cst_32 {dimension_numbers = #tpu.dot_dimension_numbers<[1], [0], [0], [1], [0, 0, 1, 1], [], []>} : vector<128x20xf32>, vector<20x128xf32>, vector<128x128xf32> -> vector<128x128xf32>
    %cst_33 = arith.constant dense<0.000000e+00> : vector<128x128xf32>
    %50 = tpu.matmul %15, %48, %cst_33 {dimension_numbers = #tpu.dot_dimension_numbers<[1], [0], [0], [1], [0, 0, 1, 1], [], []>} : vector<128x6xf32>, vector<6x128xf32>, vector<128x128xf32> -> vector<128x128xf32>
    %51 = arith.mulf %49, %50 : vector<128x128xf32>
    %52 = arith.addf %46, %51 : vector<128x128xf32>
    %c0_34 = arith.constant 0 : index
    %c768 = arith.constant 768 : index
    %53 = vector.load %arg2[%c0_34, %c768] : memref<20x1024xf32, #tpu.memory_space<vmem>>, vector<20x128xf32>
    %c0_35 = arith.constant 0 : index
    %c768_36 = arith.constant 768 : index
    %54 = vector.load %arg3[%c0_35, %c768_36] : memref<6x1024xf32, #tpu.memory_space<vmem>>, vector<6x128xf32>
    %cst_37 = arith.constant dense<0.000000e+00> : vector<128x128xf32>
    %55 = tpu.matmul %10, %53, %cst_37 {dimension_numbers = #tpu.dot_dimension_numbers<[1], [0], [0], [1], [0, 0, 1, 1], [], []>} : vector<128x20xf32>, vector<20x128xf32>, vector<128x128xf32> -> vector<128x128xf32>
    %cst_38 = arith.constant dense<0.000000e+00> : vector<128x128xf32>
    %56 = tpu.matmul %15, %54, %cst_38 {dimension_numbers = #tpu.dot_dimension_numbers<[1], [0], [0], [1], [0, 0, 1, 1], [], []>} : vector<128x6xf32>, vector<6x128xf32>, vector<128x128xf32> -> vector<128x128xf32>
    %57 = arith.mulf %55, %56 : vector<128x128xf32>
    %58 = arith.addf %52, %57 : vector<128x128xf32>
    %c0_39 = arith.constant 0 : index
    %c896 = arith.constant 896 : index
    %59 = vector.load %arg2[%c0_39, %c896] : memref<20x1024xf32, #tpu.memory_space<vmem>>, vector<20x128xf32>
    %c0_40 = arith.constant 0 : index
    %c896_41 = arith.constant 896 : index
    %60 = vector.load %arg3[%c0_40, %c896_41] : memref<6x1024xf32, #tpu.memory_space<vmem>>, vector<6x128xf32>
    %cst_42 = arith.constant dense<0.000000e+00> : vector<128x128xf32>
    %61 = tpu.matmul %10, %59, %cst_42 {dimension_numbers = #tpu.dot_dimension_numbers<[1], [0], [0], [1], [0, 0, 1, 1], [], []>} : vector<128x20xf32>, vector<20x128xf32>, vector<128x128xf32> -> vector<128x128xf32>
    %cst_43 = arith.constant dense<0.000000e+00> : vector<128x128xf32>
    %62 = tpu.matmul %15, %60, %cst_43 {dimension_numbers = #tpu.dot_dimension_numbers<[1], [0], [0], [1], [0, 0, 1, 1], [], []>} : vector<128x6xf32>, vector<6x128xf32>, vector<128x128xf32> -> vector<128x128xf32>
    %63 = arith.mulf %61, %62 : vector<128x128xf32>
    %64 = arith.addf %58, %63 : vector<128x128xf32>
    %c0_44 = arith.constant 0 : index
    %c0_45 = arith.constant 0 : index
    %65 = vector.load %arg4[%c0_44, %c0_45] : memref<128x128xf32, #tpu.memory_space<vmem>>, vector<128x128xf32>
    tpu.vector_store %arg4[%c0_44, %c0_45], %64 {strides = array<i32>} : memref<128x128xf32, #tpu.memory_space<vmem>>, vector<128x128xf32>,
    return
  }
  func.func @transform_0(%arg0: i32) -> (i32, i32) {
    %c0_i32 = arith.constant 0 : i32
    %c0_i32_0 = arith.constant 0 : i32
    return %arg0, %c0_i32 : i32, i32
  }
  func.func @transform_1(%arg0: i32) -> (i32, i32) {
    %c0_i32 = arith.constant 0 : i32
    %c0_i32_0 = arith.constant 0 : i32
    %c0_i32_1 = arith.constant 0 : i32
    return %c0_i32, %c0_i32_0 : i32, i32
  }
  func.func @transform_2(%arg0: i32) -> (i32, i32) {
    %c0_i32 = arith.constant 0 : i32
    %c0_i32_0 = arith.constant 0 : i32
    %c0_i32_1 = arith.constant 0 : i32
    return %c0_i32, %c0_i32_0 : i32, i32
  }
  func.func @transform_3(%arg0: i32) -> (i32, i32) {
    %c0_i32 = arith.constant 0 : i32
    %c0_i32_0 = arith.constant 0 : i32
    return %arg0, %c0_i32 : i32, i32
  }
}

</mosaic_0001>

<bundles_post_ra>
// kernel: tpu_custom_call.1
= control target key start
LH: loop header
LB: loop body
LE: loop exit
PB: predicated region body
PF: predicated region fallthrough
CT: control target
= control target key end

     0   :  { %8 = vsyncpa [#allocation3], 0  ;;  %s5502_s0 = inlined_call_operand.vmem [shape: s32[128,3], index: 0, kind: input, shape index: {}]   ;;  %s5503_s1 = inlined_call_operand.hbm [shape: f32[20,1024], index: 1, kind: input, shape index: {}]   ;;  %s5504_s2 = inlined_call_operand.vmem [shape: f32[6,1024], index: 2, kind: input, shape index: {}]   ;;  %s5505_s3 = inlined_call_operand.hbm [shape: f32[128,128], index: 3, kind: output, shape index: {}]  }
   0x1   :  { %9 = vsyncpa [#allocation4], 0  ;;  %s4296_s12 = smov [#allocation2]   ;;  %s4248_s16 = scalar_lea.hbm %s5503_s1, 3072 }
   0x2   :  { %s17_s13 = sshll.u32 %s4296_s12, 4  ;;  %p4249_p0 = scmp.ne.s32.totalorder %s5503_s1, %s4248_s16  ;;  %s18_s13 = int_to_ptr.vmem [resolvable:$true] %s17_s13 }
   0x3   :  { %p4252_p1 = scmp.lt.u32.totalorder %s4248_s16, %s5503_s1 }
   0x5   :  { %p4254_p2 = pnand %p4252_p1, %p4249_p0 }
   0x7   :  { %4257 = shalt.err (!%p4254_p2)
}
   0x8   :  { %s4258_s21 = scalar_lea.vmem %s18_s13, 3072  ;;  %p4263_p4 = scmp.lt.s32.totalorder %s18_s13, %s18_s13 }
   0x9   :  { %p4259_p3 = scmp.ne.s32.totalorder %s18_s13, %s4258_s21  ;;  %p4264_p5 = scmp.lt.s32.totalorder %s4258_s21, %s4258_s21 }
   0xb   :  { %p4265_p6 = por %p4264_p5, %p4263_p4 }
   0xd   :  { %p4266_p7 = pnand %p4265_p6, %p4259_p3 }
   0xf   :  { %4269 = shalt.err (!%p4266_p7)
}
  0x10   :  { %s4297_s22 = smov 1024   ;;  %s4298_s23 = smov 64  }
  0x11   :  { %23 = dma.hbm_to_vmem [thread:$0]  %s5503_s1, 3072, %s18_s13, [#allocation3], %s4297_s22, %s4297_s22, %s4298_s23  }
  0x12   :  { %4292 = dma.done.wait [#allocation3], 3072  }
  0x13   :  { %4293 = vsyncadd [#allocation3], 4294964224  ;;  %v4299_v0 = vmov 1   ;;  %v4300_v1 = vmov 0   ;;  %v29_v2 = vld [vmem:[%s5502_s0] sm:$0xff]  ;;  %v30_v3 = vld [vmem:[%s5502_s0 + $0x8] sm:$0xff]  ;;  %v61_v42 = vlaneseq }
  0x14   :  { %4223 = vset.pattern.permute.xlu1 %v4299_v0  ;;  %4222 = vset.pattern.permute.xlu0 %v4300_v1  ;;  %vm602_vm0 = vcmask 1045504   ;;  %v354_v4 = vld [vmem:[%s5504_s2] sm:$0x3f]  ;;  %v32_v5 = vld [vmem:[%s5502_s0 + $0x18] sm:$0xff]  ;;  %v45_v6 = vcvt.s32.f32 %v29_v2  ;;  %v4301_v7 = vmov 2   ;;  %v34_v8 = vld [vmem:[%s5502_s0 + $0x28] sm:$0xff]  ;;  %v46_v20 = vcvt.s32.f32 %v30_v3 }
  0x15   :  { %256 = vperm.xlu1 %4223, %v29_v2   ;;  %64 = vperm.xlu0 %4222, %v29_v2   ;;  %v31_v9 = vld [vmem:[%s5502_s0 + $0x10] sm:$0xff]  ;;  %v36_v10 = vld [vmem:[%s5502_s0 + $0x38] sm:$0xff]  ;;  %v4368_v12 = vld [vmem:[%s5502_s0 + $0x48] sm:$0xff]  ;;  %vm404_vm1 = vcmask 1043456   ;;  %v48_v23 = vcvt.s32.f32 %v32_v5  ;;  %v50_v24 = vcvt.s32.f32 %v34_v8  ;;  %v4439_v43 = vand.u32 127, %v61_v42 }
  0x16   :  { %3762 = vmatprep.subr.msk.mxu1 %vm602_vm0, %v354_v4  ;;  %v47_v11 = vcvt.s32.f32 %v31_v9  ;;  %v4375_v13 = vld [vmem:[%s5502_s0 + $0x58] sm:$0xff]  ;;  %v4382_v14 = vld [vmem:[%s5502_s0 + $0x68] sm:$0xff]  ;;  %v33_v16 = vld [vmem:[%s5502_s0 + $0x20] sm:$0xff]  ;;  %v52_v25 = vcvt.s32.f32 %v36_v10  ;;  %v54_v27 = vcvt.s32.f32 %v4368_v12  ;;  %vm553_vm2 = vcmask 48128  }
  0x17   :  { %3763 = vmatpush3.msk.msra.mxu1 %vm602_vm0, %v354_v4  ;;  %v4388_v15 = vld [vmem:[%s5502_s0 + $0x78] sm:$0xff]  ;;  %v351_v17 = vld [vmem:[#allocation2] sm:$0xff]  ;;  %v49_v21 = vcvt.s32.f32 %v33_v16  ;;  %v35_v26 = vld [vmem:[%s5502_s0 + $0x30] sm:$0xff]  ;;  %v56_v29 = vcvt.s32.f32 %v4375_v13  ;;  %v58_v30 = vcvt.s32.f32 %v4382_v14  ;;  %v4302_v47 = vmov 0.0  }
  0x18   :  { %v352_v18 = vld [vmem:[#allocation2 + $0x40] sm:$0xff]  ;;  %v51_v28 = vcvt.s32.f32 %v35_v26  ;;  %v60_v31 = vcvt.s32.f32 %v4388_v15  ;;  %v39_v34 = vld [vmem:[%s5502_s0 + $0x50] sm:$0xff]  ;;  %v783_v38 = vld [vmem:[#allocation2 + $0x8] sm:$0xff]  ;;  %vm355_vm6 = vcmask 162816  }
  0x19   :  { %259 = vperm.xlu1 %4223, %v30_v3   ;;  %67 = vperm.xlu0 %4222, %v30_v3   ;;  %v4180_v19 = vpack.c.bf16 %v352_v18, %v351_v17  ;;  %v353_v22 = vld [vmem:[#allocation2 + $0x80] sm:$0xf]  ;;  %v55_v35 = vcvt.s32.f32 %v39_v34  ;;  %v784_v39 = vld [vmem:[#allocation2 + $0x48] sm:$0xff]  ;;  %v43_v44 = vld [vmem:[%s5502_s0 + $0x70] sm:$0xff] }
  0x1a   :  { %v37_v32 = vld [vmem:[%s5502_s0 + $0x40] sm:$0xff]  ;;  %v4433_v40 = vld [vmem:[%s5504_s2 + $0x8] sm:$0x3f]  ;;  %v4184_v41 = vpack.c.bf16 %v784_v39, %v783_v38  ;;  %v59_v49 = vcvt.s32.f32 %v43_v44  ;;  %v1115_v61 = vld [vmem:[#allocation2 + $0x10] sm:$0xff] }
  0x1b   :  { %4181 = vmatprep.subr.bf16.mxu0 %v4180_v19  ;;  %v53_v33 = vcvt.s32.f32 %v37_v32  ;;  %v41_v36 = vld [vmem:[%s5502_s0 + $0x60] sm:$0xff]  ;;  %v785_v53 = vld [vmem:[#allocation2 + $0x88] sm:$0xf]  ;;  %v1116_v62 = vld [vmem:[#allocation2 + $0x50] sm:$0xff] }
  0x1c   :  { %4183 = vmatpush3.bf16.msra.mxu0 %v4180_v19  ;;  %v57_v37 = vcvt.s32.f32 %v41_v36  ;;  %4185 = vmatprep.subr.bf16.mxu1 %v4184_v41  ;;  %v4505_v17 = vld [vmem:[%s5504_s2 + $0x10] sm:$0x3f] }
  0x1d   :  { %4224 = vset.pattern.permute.xlu1 %v4301_v7  ;;  %73 = vperm.xlu0 %4222, %v32_v5  }
  0x1e   :  { %161 = vperm.xlu1 %4224, %v45_v6   ;;  %3736 = vmatprep.subr.msk.mxu0 %vm404_vm1, %v353_v22 }
  0x20   :  { %3737 = vmatpush3.msk.msra.mxu0 %vm404_vm1, %v353_v22 }
  0x21   :  { %79 = vperm.xlu0 %4222, %v34_v8   ;;  %3818 = vmatprep.subr.msk.mxu0 %vm602_vm0, %v4433_v40 }
  0x22   :  { %4225 = vset.pattern.permute.xlu1 %v4300_v1 }
  0x23   :  { %70 = vperm.xlu1 %4225, %v31_v9  }
  0x25   :  { %85 = vperm.xlu0 %4222, %v36_v10  }
  0x27   :  { %4226 = vset.pattern.permute.xlu1 %v4301_v7 }
  0x28   :  { %171 = vperm.xlu1 %4226, %v47_v11  }
  0x29   :  { %91 = vperm.xlu0 %4222, %v4368_v12  }
  0x2c   :  { %4227 = vset.pattern.permute.xlu1 %v4299_v0 }
  0x2d   :  { %97 = vperm.xlu0 %4222, %v4375_v13   ;;  %262 = vperm.xlu1 %4227, %v31_v9  }
  0x31   :  { %103 = vperm.xlu0 %4222, %v4382_v14   ;;  %265 = vperm.xlu1 %4227, %v32_v5  }
  0x35   :  { %109 = vperm.xlu0 %4222, %v4388_v15   ;;  %4228 = vset.pattern.permute.xlu1 %v4300_v1 }
  0x36   :  { %76 = vperm.xlu1 %4228, %v33_v16  }
  0x39   :  { %4244 = vset.pattern.permute.xlu0 %v4301_v7 }
  0x3a   :  { %166 = vperm.xlu0 %4244, %v46_v20   ;;  %4229 = vset.pattern.permute.xlu1 %v4301_v7 }
  0x3b   :  { %181 = vperm.xlu1 %4229, %v49_v21  }
  0x3e   :  { %176 = vperm.xlu0 %4244, %v48_v23  }
  0x3f   :  { %4230 = vset.pattern.permute.xlu1 %v4299_v0 }
  0x40   :  { %268 = vperm.xlu1 %4230, %v33_v16  }
  0x42   :  { %186 = vperm.xlu0 %4244, %v50_v24  }
  0x44   :  { %271 = vperm.xlu1 %4230, %v34_v8  }
  0x46   :  { %196 = vperm.xlu0 %4244, %v52_v25  }
  0x48   :  { %4231 = vset.pattern.permute.xlu1 %v4300_v1 }
  0x49   :  { %82 = vperm.xlu1 %4231, %v35_v26  }
  0x4a   :  { %206 = vperm.xlu0 %4244, %v54_v27  }
  0x4d   :  { %4232 = vset.pattern.permute.xlu1 %v4301_v7 }
  0x4e   :  { %191 = vperm.xlu1 %4232, %v51_v28   ;;  %216 = vperm.xlu0 %4244, %v56_v29  }
  0x52   :  { %4233 = vset.pattern.permute.xlu1 %v4299_v0  ;;  %226 = vperm.xlu0 %4244, %v58_v30  }
  0x53   :  { %274 = vperm.xlu1 %4233, %v35_v26  }
  0x56   :  { %236 = vperm.xlu0 %4244, %v60_v31  }
  0x57   :  { %277 = vperm.xlu1 %4233, %v36_v10  }
  0x5a   :  { %4247 = vset.pattern.permute.xlu0 %v4299_v0 }
  0x5b   :  { %4234 = vset.pattern.permute.xlu1 %v4300_v1 }
  0x5c   :  { %88 = vperm.xlu1 %4234, %v37_v32  }
  0x60   :  { %4235 = vset.pattern.permute.xlu1 %v4301_v7 }
  0x61   :  { %201 = vperm.xlu1 %4235, %v53_v33  }
  0x65   :  { %4236 = vset.pattern.permute.xlu1 %v4299_v0 }
  0x66   :  { %280 = vperm.xlu1 %4236, %v37_v32  }
  0x6a   :  { %283 = vperm.xlu1 %4236, %v4368_v12  }
  0x6e   :  { %4237 = vset.pattern.permute.xlu1 %v4300_v1 }
  0x6f   :  { %94 = vperm.xlu1 %4237, %v39_v34  }
  0x73   :  { %4238 = vset.pattern.permute.xlu1 %v4301_v7 }
  0x74   :  { %211 = vperm.xlu1 %4238, %v55_v35  }
  0x78   :  { %4239 = vset.pattern.permute.xlu1 %v4299_v0 }
  0x79   :  { %286 = vperm.xlu1 %4239, %v39_v34  }
  0x7d   :  { %289 = vperm.xlu1 %4239, %v4375_v13  }
  0x81   :  { %4240 = vset.pattern.permute.xlu1 %v4300_v1 }
  0x82   :  { %100 = vperm.xlu1 %4240, %v41_v36  }
  0x86   :  { %4241 = vset.pattern.permute.xlu1 %v4301_v7 }
  0x87   :  { %221 = vperm.xlu1 %4241, %v57_v37  }
  0x8b   :  { %4242 = vset.pattern.permute.xlu1 %v4299_v0 }
  0x8c   :  { %292 = vperm.xlu1 %4242, %v41_v36  }
  0x90   :  { %295 = vperm.xlu1 %4242, %v4382_v14  }
  0x94   :  { %v257_v45 = vpop.permute.xlu1 %256  ;;  %4243 = vset.pattern.permute.xlu1 %v4300_v1  ;;  %v65_v46 = vpop.permute.xlu0 %64  ;;  %v4468_v1 = vpack.c.bf16 %v1116_v62, %v1115_v61 }
  0x95   :  { %vm303_vm3 = vcmp.eq.s32.totalorder %v4439_v43, %v257_v45  ;;  %106 = vperm.xlu1 %4243, %v43_v44   ;;  %vm111_vm4 = vcmp.eq.s32.totalorder %v4439_v43, %v65_v46 }
  0x96   :  { %v4447_v48 = vsel %vm303_vm3, 1.0, %v4302_v47  ;;  %v3140_v54 = vsel %vm111_vm4, 1.0, %v4302_v47 }
  0x97   :  { %3764 = vmatprep.mubr.msk.f32.mxu1 %vm553_vm2, %v4447_v48 }
  0x98   :  { %v260_v50 = vpop.permute.xlu1 %259  ;;  %v68_v51 = vpop.permute.xlu0 %67 }
  0x99   :  { %vm304_vm5 = vcmp.eq.s32.totalorder %v4439_v43, %v260_v50  ;;  %4245 = vset.pattern.permute.xlu1 %v4301_v7  ;;  %vm112_vm9 = vcmp.eq.s32.totalorder %v4439_v43, %v68_v51 }
  0x9a   :  { %v4455_v52 = vsel %vm304_vm5, 1.0, %v4302_v47  ;;  %231 = vperm.xlu1 %4245, %v59_v49   ;;  %v3141_v10 = vsel %vm112_vm9, 1.0, %v4302_v47 }
  0x9b   :  { %3765 = vmatmul.mubr.msk.f32.vlgmr.msra.gmra.mrb[0].mxu1 %vm553_vm2, %v4455_v52 }
  0x9c   :  { %v74_v55 = vpop.permute.xlu0 %73  ;;  %4187 = vmatpush3.bf16.msra.mxu1 %v4184_v41 }
  0x9d   :  { %v162_v56 = vpop.permute.xlu1 %161  ;;  %3792 = vmatprep.subr.msk.mxu1 %vm404_vm1, %v785_v53  ;;  %vm114_vm11 = vcmp.eq.s32.totalorder %v4439_v43, %v74_v55 }
  0x9e   :  { %v4461_v57 = vmul.f32 %v3140_v54, %v162_v56  ;;  %4246 = vset.pattern.permute.xlu1 %v4299_v0  ;;  %v3143_v16 = vsel %vm114_vm11, 1.0, %v4302_v47 }
  0x9f   :  { %298 = vperm.xlu1 %4246, %v43_v44  }
  0xa0   :  { %3738 = vmatprep.mubr.msk.f32.mxu0 %vm355_vm6, %v4461_v57  ;;  %v80_v58 = vpop.permute.xlu0 %79  ;;  %3793 = vmatpush3.msk.msra.mxu1 %vm404_vm1, %v785_v53 }
  0xa1   :  { %4189 = vmatprep.subr.bf16.mxu1 %v4468_v1  ;;  %vm116_vm13 = vcmp.eq.s32.totalorder %v4439_v43, %v80_v58 }
  0xa2   :  { %v71_v59 = vpop.permute.xlu1 %70  ;;  %v3145_v23 = vsel %vm116_vm13, 1.0, %v4302_v47 }
  0xa3   :  { %301 = vperm.xlu1 %4246, %v4388_v15   ;;  %vm113_vm10 = vcmp.eq.s32.totalorder %v4439_v43, %v71_v59 }
  0xa4   :  { %v86_v60 = vpop.permute.xlu0 %85  ;;  %v3142_v12 = vsel %vm113_vm10, 1.0, %v4302_v47 }
  0xa5   :  { %vm118_vm3 = vcmp.eq.s32.totalorder %v4439_v43, %v86_v60 }
  0xa6   :  { %v3147_v30 = vsel %vm118_vm3, 1.0, %v4302_v47 }
  0xa7   :  { %v172_v63 = vpop.permute.xlu1 %171 }
  0xa8   :  { %v4470_v2 = vpop.permute.xlu0 %91  ;;  %v4498_v15 = vmul.f32 %v3142_v12, %v172_v63 }
  0xac   :  { %v263_v0 = vpop.permute.xlu1 %262  ;;  %v4473_v3 = vpop.permute.xlu0 %97 }
  0xad   :  { %vm305_vm7 = vcmp.eq.s32.totalorder %v4439_v43, %v263_v0 }
  0xae   :  { %v4477_v4 = vsel %vm305_vm7, 1.0, %v4302_v47 }
  0xaf   :  { %3767 = vmatprep.mubr.msk.f32.mxu1 %vm553_vm2, %v4477_v4 }
  0xb0   :  { %v266_v5 = vpop.permute.xlu1 %265  ;;  %v4481_v6 = vpop.permute.xlu0 %103 }
  0xb1   :  { %vm306_vm8 = vcmp.eq.s32.totalorder %v4439_v43, %v266_v5  ;;  %vm124_vm3 = vcmp.eq.s32.totalorder %v4439_v43, %v4481_v6 }
  0xb2   :  { %v4485_v7 = vsel %vm306_vm8, 1.0, %v4302_v47  ;;  %vm120_vm8 = vcmp.eq.s32.totalorder %v4439_v43, %v4470_v2 }
  0xb3   :  { %3768 = vmatmul.mubr.msk.f32.gmra.mrb[2].mxu1 %vm553_vm2, %v4485_v7  ;;  %v3149_v41 = vsel %vm120_vm8, 1.0, %v4302_v47 }
  0xb4   :  { %v4490_v8 = vpop.permute.xlu0 %109 }
  0xb5   :  { %v77_v9 = vpop.permute.xlu1 %76  ;;  %vm126_vm8 = vcmp.eq.s32.totalorder %v4439_v43, %v4490_v8 }
  0xb6   :  { %vm115_vm12 = vcmp.eq.s32.totalorder %v4439_v43, %v77_v9  ;;  %v3153_v9 = vsel %vm124_vm3, 1.0, %v4302_v47 }
  0xb7   :  { %v3144_v19 = vsel %vm115_vm12, 1.0, %v4302_v47  ;;  %vm122_vm12 = vcmp.eq.s32.totalorder %v4439_v43, %v4473_v3 }
  0xb8   :  { %v3151_v56 = vsel %vm122_vm12, 1.0, %v4302_v47 }
  0xb9   :  { %v167_v11 = vpop.permute.xlu0 %166 }
  0xba   :  { %v4496_v13 = vmul.f32 %v3141_v10, %v167_v11  ;;  %v182_v14 = vpop.permute.xlu1 %181 }
  0xbb   :  { %v4519_v21 = vmul.f32 %v3144_v19, %v182_v14 }
  0xbc   :  { %3739 = vmatmul.mubr.msk.f32.vlgmr.msra.gmra.mrb[0].mxu0 %vm355_vm6, %v4496_v13 }
  0xbd   :  { %v177_v18 = vpop.permute.xlu0 %176  ;;  %3741 = vmatprep.mubr.msk.f32.mxu0 %vm355_vm6, %v4498_v15  ;;  %3819 = vmatpush3.msk.msra.mxu0 %vm602_vm0, %v4433_v40 }
  0xbe   :  { %v4515_v20 = vmul.f32 %v3143_v16, %v177_v18  ;;  %3874 = vmatprep.subr.msk.mxu0 %vm602_vm0, %v4505_v17 }
  0xbf   :  { %v269_v22 = vpop.permute.xlu1 %268 }
  0xc0   :  { %vm307_vm14 = vcmp.eq.s32.totalorder %v4439_v43, %v269_v22  ;;  %3742 = vmatmul.mubr.msk.f32.gmra.mrb[2].mxu0 %vm355_vm6, %v4515_v20 }
  0xc1   :  { %v4526_v24 = vsel %vm307_vm14, 1.0, %v4302_v47  ;;  %3744 = vmatprep.mubr.msk.f32.mxu0 %vm355_vm6, %v4519_v21  ;;  %v187_v25 = vpop.permute.xlu0 %186 }
  0xc2   :  { %3770 = vmatprep.mubr.msk.f32.mxu1 %vm553_vm2, %v4526_v24  ;;  %v4532_v26 = vmul.f32 %v3145_v23, %v187_v25  ;;  %v3155_v25 = vsel %vm126_vm8, 1.0, %v4302_v47 }
  0xc3   :  { %v272_v27 = vpop.permute.xlu1 %271 }
  0xc4   :  { %vm308_vm15 = vcmp.eq.s32.totalorder %v4439_v43, %v272_v27  ;;  %3745 = vmatmul.mubr.msk.f32.gmra.mrb[4].mxu0 %vm355_vm6, %v4532_v26 }
  0xc5   :  { %v4538_v28 = vsel %vm308_vm15, 1.0, %v4302_v47  ;;  %v197_v31 = vpop.permute.xlu0 %196 }
  0xc6   :  { %3771 = vmatmul.mubr.msk.f32.gmra.mrb[4].mxu1 %vm553_vm2, %v4538_v28  ;;  %v4546_v34 = vmul.f32 %v3147_v30, %v197_v31 }
  0xc8   :  { %v83_v29 = vpop.permute.xlu1 %82 }
  0xc9   :  { %vm117_vm4 = vcmp.eq.s32.totalorder %v4439_v43, %v83_v29  ;;  %v207_v42 = vpop.permute.xlu0 %206 }
  0xca   :  { %v3146_v32 = vsel %vm117_vm4, 1.0, %v4302_v47  ;;  %v4570_v44 = vmul.f32 %v3149_v41, %v207_v42  ;;  %v1449_v42 = vld [vmem:[#allocation2 + $0x98] sm:$0xf] }
  0xcd   :  { %v192_v33 = vpop.permute.xlu1 %191  ;;  %v217_v60 = vpop.permute.xlu0 %216 }
  0xce   :  { %v4548_v35 = vmul.f32 %v3146_v32, %v192_v33  ;;  %v4598_v62 = vmul.f32 %v3151_v56, %v217_v60  ;;  %v2111_v56 = vld [vmem:[#allocation2 + $0x28] sm:$0xff] }
  0xd0   :  { %3747 = vmatprep.mubr.msk.f32.mxu0 %vm355_vm6, %v4548_v35 }
  0xd1   :  { %3748 = vmatmul.mubr.msk.f32.gmra.mrb[6].mxu0 %vm355_vm6, %v4546_v34  ;;  %v227_v12 = vpop.permute.xlu0 %226 }
  0xd2   :  { %v275_v36 = vpop.permute.xlu1 %274  ;;  %v4623_v16 = vmul.f32 %v3153_v9, %v227_v12  ;;  %v2444_v12 = vld [vmem:[#allocation2 + $0x70] sm:$0xff] }
  0xd3   :  { %vm309_vm5 = vcmp.eq.s32.totalorder %v4439_v43, %v275_v36  ;;  %v1450_v36 = vld [vmem:[%s5504_s2 + $0x18] sm:$0x3f] }
  0xd4   :  { %v4556_v37 = vsel %vm309_vm5, 1.0, %v4302_v47 }
  0xd5   :  { %3773 = vmatprep.mubr.msk.f32.mxu1 %vm553_vm2, %v4556_v37  ;;  %v237_v27 = vpop.permute.xlu0 %236 }
  0xd6   :  { %v278_v38 = vpop.permute.xlu1 %277  ;;  %v4648_v32 = vmul.f32 %v3155_v25, %v237_v27 }
  0xd7   :  { %vm310_vm7 = vcmp.eq.s32.totalorder %v4439_v43, %v278_v38 }
  0xd8   :  { %v4562_v39 = vsel %vm310_vm7, 1.0, %v4302_v47 }
  0xd9   :  { %3774 = vmatmul.mubr.msk.f32.gmra.mrb[6].mxu1 %vm553_vm2, %v4562_v39 }
  0xdb   :  { %v89_v40 = vpop.permute.xlu1 %88 }
  0xdc   :  { %vm119_vm9 = vcmp.eq.s32.totalorder %v4439_v43, %v89_v40 }
  0xdd   :  { %v3148_v45 = vsel %vm119_vm9, 1.0, %v4302_v47 }
  0xe0   :  { %v202_v46 = vpop.permute.xlu1 %201 }
  0xe1   :  { %v4573_v49 = vmul.f32 %v3148_v45, %v202_v46  ;;  %v1779_v45 = vld [vmem:[#allocation2 + $0x20] sm:$0xff] }
  0xe2   :  { %v1780_v46 = vld [vmem:[#allocation2 + $0x60] sm:$0xff] }
  0xe3   :  { %3750 = vmatprep.mubr.msk.f32.mxu0 %vm355_vm6, %v4573_v49 }
  0xe4   :  { %3751 = vmatmul.mubr.msk.f32.gmra.mrb[8].mxu0 %vm355_vm6, %v4570_v44 }
  0xe5   :  { %v281_v50 = vpop.permute.xlu1 %280 }
  0xe6   :  { %vm311_vm10 = vcmp.eq.s32.totalorder %v4439_v43, %v281_v50  ;;  %v4196_v50 = vpack.c.bf16 %v1780_v46, %v1779_v45 }
  0xe7   :  { %v4581_v51 = vsel %vm311_vm10, 1.0, %v4302_v47 }
  0xe8   :  { %3776 = vmatprep.mubr.msk.f32.mxu1 %vm553_vm2, %v4581_v51 }
  0xe9   :  { %v284_v53 = vpop.permute.xlu1 %283 }
  0xea   :  { %vm312_vm11 = vcmp.eq.s32.totalorder %v4439_v43, %v284_v53  ;;  %v2114_v53 = vld [vmem:[%s5504_s2 + $0x28] sm:$0x3f] }
  0xeb   :  { %v4587_v54 = vsel %vm312_vm11, 1.0, %v4302_v47 }
  0xec   :  { %3777 = vmatmul.mubr.msk.f32.gmra.mrb[8].mxu1 %vm553_vm2, %v4587_v54 }
  0xee   :  { %v95_v55 = vpop.permute.xlu1 %94 }
  0xef   :  { %vm121_vm13 = vcmp.eq.s32.totalorder %v4439_v43, %v95_v55  ;;  %v1781_v55 = vld [vmem:[#allocation2 + $0xa0] sm:$0xf] }
  0xf0   :  { %v3150_v58 = vsel %vm121_vm13, 1.0, %v4302_v47 }
  0xf3   :  { %v212_v59 = vpop.permute.xlu1 %211 }
  0xf4   :  { %v4596_v61 = vmul.f32 %v3150_v58, %v212_v59  ;;  %v2112_v58 = vld [vmem:[#allocation2 + $0x68] sm:$0xff] }
  0xf5   :  { %v4200_v59 = vpack.c.bf16 %v2112_v58, %v2111_v56 }
  0xf6   :  { %3753 = vmatprep.mubr.msk.f32.mxu0 %vm355_vm6, %v4596_v61 }
  0xf7   :  { %3754 = vmatmul.mubr.msk.f32.gmra.mrb[10].mxu0 %vm355_vm6, %v4598_v62 }
  0xf8   :  { %v287_v63 = vpop.permute.xlu1 %286 }
  0xf9   :  { %vm313_vm14 = vcmp.eq.s32.totalorder %v4439_v43, %v287_v63 }
  0xfa   :  { %v4606_v2 = vsel %vm313_vm14, 1.0, %v4302_v47 }
  0xfb   :  { %3779 = vmatprep.mubr.msk.f32.mxu1 %vm553_vm2, %v4606_v2 }
  0xfc   :  { %v290_v0 = vpop.permute.xlu1 %289 }
  0xfd   :  { %vm314_vm15 = vcmp.eq.s32.totalorder %v4439_v43, %v290_v0  ;;  %v2446_v0 = vld [vmem:[%s5504_s2 + $0x30] sm:$0x3f] }
  0xfe   :  { %v4612_v3 = vsel %vm314_vm15, 1.0, %v4302_v47 }
  0xff   :  { %3780 = vmatmul.mubr.msk.f32.gmra.mrb[10].mxu1 %vm553_vm2, %v4612_v3 }
 0x101   :  { %v101_v5 = vpop.permute.xlu1 %100 }
 0x102   :  { %vm123_vm4 = vcmp.eq.s32.totalorder %v4439_v43, %v101_v5 }
 0x103   :  { %v3152_v10 = vsel %vm123_vm4, 1.0, %v4302_v47 }
 0x106   :  { %v222_v11 = vpop.permute.xlu1 %221 }
 0x107   :  { %v4621_v14 = vmul.f32 %v3152_v10, %v222_v11  ;;  %v2113_v10 = vld [vmem:[#allocation2 + $0xa8] sm:$0xf]  ;;  %v2443_v11 = vld [vmem:[#allocation2 + $0x30] sm:$0xff] }
 0x109   :  { %3756 = vmatprep.mubr.msk.f32.mxu0 %vm355_vm6, %v4621_v14 }
 0x10a   :  { %3757 = vmatmul.mubr.msk.f32.gmra.mrb[12].mxu0 %vm355_vm6, %v4623_v16 }
 0x10b   :  { %v293_v18 = vpop.permute.xlu1 %292 }
 0x10c   :  { %vm315_vm5 = vcmp.eq.s32.totalorder %v4439_v43, %v293_v18  ;;  %v4204_v18 = vpack.c.bf16 %v2444_v12, %v2443_v11 }
 0x10d   :  { %v4631_v6 = vsel %vm315_vm5, 1.0, %v4302_v47 }
 0x10e   :  { %3782 = vmatprep.mubr.msk.f32.mxu1 %vm553_vm2, %v4631_v6 }
 0x10f   :  { %v296_v19 = vpop.permute.xlu1 %295 }
 0x110   :  { %vm316_vm7 = vcmp.eq.s32.totalorder %v4439_v43, %v296_v19 }
 0x111   :  { %v4637_v22 = vsel %vm316_vm7, 1.0, %v4302_v47 }
 0x112   :  { %3783 = vmatmul.mubr.msk.f32.gmra.mrb[12].mxu1 %vm553_vm2, %v4637_v22 }
 0x114   :  { %v107_v23 = vpop.permute.xlu1 %106 }
 0x115   :  { %vm125_vm9 = vcmp.eq.s32.totalorder %v4439_v43, %v107_v23 }
 0x116   :  { %v3154_v29 = vsel %vm125_vm9, 1.0, %v4302_v47 }
 0x119   :  { %v232_v30 = vpop.permute.xlu1 %231 }
 0x11a   :  { %v4646_v31 = vmul.f32 %v3154_v29, %v232_v30 }
 0x11c   :  { %3759 = vmatprep.mubr.msk.f32.mxu0 %vm355_vm6, %v4646_v31 }
 0x11d   :  { %3760 = vmatmul.mubr.msk.f32.gmra.mrb[14].mxu0 %vm355_vm6, %v4648_v32 }
 0x11e   :  { %3820 = vmatprep.mubr.msk.f32.mxu0 %vm553_vm2, %v4447_v48  ;;  %v299_v8 = vpop.permute.xlu1 %298 }
 0x11f   :  { %vm317_vm10 = vcmp.eq.s32.totalorder %v4439_v43, %v299_v8 }
 0x120   :  { %v4658_v33 = vsel %vm317_vm10, 1.0, %v4302_v47 }
 0x121   :  { %3785 = vmatprep.mubr.msk.f32.mxu1 %vm553_vm2, %v4658_v33  ;;  %3821 = vmatmul.mubr.msk.f32.vlgmr.msra.gmra.mrb[16].mxu0 %vm553_vm2, %v4455_v52 }
 0x122   :  { %3823 = vmatprep.mubr.msk.f32.mxu0 %vm553_vm2, %v4477_v4  ;;  %v302_v38 = vpop.permute.xlu1 %301  ;;  %3875 = vmatpush3.msk.msra.mxu0 %vm602_vm0, %v4505_v17  ;;  %v1117_v17 = vld [vmem:[#allocation2 + $0x90] sm:$0xf] }
 0x123   :  { %vm318_vm11 = vcmp.eq.s32.totalorder %v4439_v43, %v302_v38  ;;  %3930 = vmatprep.subr.msk.mxu0 %vm602_vm0, %v1450_v36  ;;  %v1447_v43 = vld [vmem:[#allocation2 + $0x18] sm:$0xff] }
 0x124   :  { %v4674_v40 = vsel %vm318_vm11, 1.0, %v4302_v47  ;;  %v1448_v47 = vld [vmem:[#allocation2 + $0x58] sm:$0xff] }
 0x125   :  { %3786 = vmatmul.mubr.msk.f32.gmra.mrb[14].mxu1 %vm553_vm2, %v4674_v40  ;;  %3824 = vmatmul.mubr.msk.f32.gmra.mrb[18].mxu0 %vm553_vm2, %v4485_v7  ;;  %v4192_v41 = vpack.c.bf16 %v1448_v47, %v1447_v43 }
 0x126   :  { %3794 = vmatprep.mubr.msk.f32.mxu1 %vm355_vm6, %v4461_v57  ;;  %3826 = vmatprep.mubr.msk.f32.mxu0 %vm553_vm2, %v4526_v24 }
 0x129   :  { %3795 = vmatmul.mubr.msk.f32.vlgmr.msra.gmra.mrb[16].mxu1 %vm355_vm6, %v4496_v13  ;;  %3827 = vmatmul.mubr.msk.f32.gmra.mrb[20].mxu0 %vm553_vm2, %v4538_v28 }
 0x12a   :  { %4191 = vmatpush3.bf16.msra.mxu1 %v4468_v1  ;;  %3797 = vmatprep.mubr.msk.f32.mxu1 %vm355_vm6, %v4498_v15  ;;  %v1782_v1 = vld [vmem:[%s5504_s2 + $0x20] sm:$0x3f] }
 0x12b   :  { %3829 = vmatprep.mubr.msk.f32.mxu0 %vm553_vm2, %v4556_v37  ;;  %3848 = vmatprep.subr.msk.mxu1 %vm404_vm1, %v1117_v17 }
 0x12d   :  { %3798 = vmatmul.mubr.msk.f32.gmra.mrb[18].mxu1 %vm355_vm6, %v4515_v20  ;;  %3830 = vmatmul.mubr.msk.f32.gmra.mrb[22].mxu0 %vm553_vm2, %v4562_v39 }
 0x12e   :  { %3800 = vmatprep.mubr.msk.f32.mxu1 %vm355_vm6, %v4519_v21  ;;  %3832 = vmatprep.mubr.msk.f32.mxu0 %vm553_vm2, %v4581_v51 }
 0x12f   :  { %3849 = vmatpush3.msk.msra.mxu1 %vm404_vm1, %v1117_v17 }
 0x130   :  { %4193 = vmatprep.subr.bf16.mxu1 %v4192_v41 }
 0x131   :  { %3801 = vmatmul.mubr.msk.f32.gmra.mrb[20].mxu1 %vm355_vm6, %v4532_v26  ;;  %3833 = vmatmul.mubr.msk.f32.gmra.mrb[24].mxu0 %vm553_vm2, %v4587_v54 }
 0x132   :  { %3803 = vmatprep.mubr.msk.f32.mxu1 %vm355_vm6, %v4548_v35  ;;  %3835 = vmatprep.mubr.msk.f32.mxu0 %vm553_vm2, %v4606_v2 }
 0x135   :  { %3804 = vmatmul.mubr.msk.f32.gmra.mrb[22].mxu1 %vm355_vm6, %v4546_v34  ;;  %3836 = vmatmul.mubr.msk.f32.gmra.mrb[26].mxu0 %vm553_vm2, %v4612_v3 }
 0x136   :  { %3806 = vmatprep.mubr.msk.f32.mxu1 %vm355_vm6, %v4573_v49  ;;  %3838 = vmatprep.mubr.msk.f32.mxu0 %vm553_vm2, %v4631_v6 }
 0x139   :  { %3807 = vmatmul.mubr.msk.f32.gmra.mrb[24].mxu1 %vm355_vm6, %v4570_v44  ;;  %3839 = vmatmul.mubr.msk.f32.gmra.mrb[28].mxu0 %vm553_vm2, %v4637_v22 }
 0x13a   :  { %3809 = vmatprep.mubr.msk.f32.mxu1 %vm355_vm6, %v4596_v61  ;;  %3841 = vmatprep.mubr.msk.f32.mxu0 %vm553_vm2, %v4658_v33 }
 0x13d   :  { %3810 = vmatmul.mubr.msk.f32.gmra.mrb[26].mxu1 %vm355_vm6, %v4598_v62  ;;  %3842 = vmatmul.mubr.msk.f32.gmra.mrb[30].mxu0 %vm553_vm2, %v4674_v40 }
 0x13e   :  { %3812 = vmatprep.mubr.msk.f32.mxu1 %vm355_vm6, %v4621_v14  ;;  %3876 = vmatprep.mubr.msk.f32.mxu0 %vm553_vm2, %v4447_v48 }
 0x141   :  { %3813 = vmatmul.mubr.msk.f32.gmra.mrb[28].mxu1 %vm355_vm6, %v4623_v16  ;;  %3877 = vmatmul.mubr.msk.f32.vlgmr.msra.gmra.mrb[32].mxu0 %vm553_vm2, %v4455_v52 }
 0x142   :  { %3815 = vmatprep.mubr.msk.f32.mxu1 %vm355_vm6, %v4646_v31  ;;  %3879 = vmatprep.mubr.msk.f32.mxu0 %vm553_vm2, %v4477_v4 }
 0x143   :  { %3931 = vmatpush3.msk.msra.mxu0 %vm602_vm0, %v1450_v36 }
 0x144   :  { %3986 = vmatprep.subr.msk.mxu0 %vm602_vm0, %v1782_v1 }
 0x145   :  { %3816 = vmatmul.mubr.msk.f32.gmra.mrb[30].mxu1 %vm355_vm6, %v4648_v32  ;;  %3880 = vmatmul.mubr.msk.f32.gmra.mrb[34].mxu0 %vm553_vm2, %v4485_v7 }
 0x146   :  { %3850 = vmatprep.mubr.msk.f32.mxu1 %vm355_vm6, %v4461_v57  ;;  %3882 = vmatprep.mubr.msk.f32.mxu0 %vm553_vm2, %v4526_v24 }
 0x149   :  { %3851 = vmatmul.mubr.msk.f32.vlgmr.msra.gmra.mrb[32].mxu1 %vm355_vm6, %v4496_v13  ;;  %3883 = vmatmul.mubr.msk.f32.gmra.mrb[36].mxu0 %vm553_vm2, %v4538_v28 }
 0x14a   :  { %4195 = vmatpush3.bf16.msra.mxu1 %v4192_v41  ;;  %3853 = vmatprep.mubr.msk.f32.mxu1 %vm355_vm6, %v4498_v15 }
 0x14b   :  { %3885 = vmatprep.mubr.msk.f32.mxu0 %vm553_vm2, %v4556_v37  ;;  %3904 = vmatprep.subr.msk.mxu1 %vm404_vm1, %v1449_v42 }
 0x14d   :  { %3854 = vmatmul.mubr.msk.f32.gmra.mrb[34].mxu1 %vm355_vm6, %v4515_v20  ;;  %3886 = vmatmul.mubr.msk.f32.gmra.mrb[38].mxu0 %vm553_vm2, %v4562_v39 }
 0x14e   :  { %3856 = vmatprep.mubr.msk.f32.mxu1 %vm355_vm6, %v4519_v21  ;;  %3888 = vmatprep.mubr.msk.f32.mxu0 %vm553_vm2, %v4581_v51 }
 0x14f   :  { %3905 = vmatpush3.msk.msra.mxu1 %vm404_vm1, %v1449_v42  ;;  %v2778_v42 = vld [vmem:[%s5504_s2 + $0x38] sm:$0x3f]  ;;  %s4303_s2 = smov [#allocation5]  }
 0x150   :  { %4197 = vmatprep.subr.bf16.mxu1 %v4196_v50  ;;  %s3128_s17 = sshll.u32 %s4303_s2, 4  ;;  %s3129_s17 = int_to_ptr.vmem [resolvable:$true] %s3128_s17 }
 0x151   :  { %3857 = vmatmul.mubr.msk.f32.gmra.mrb[36].mxu1 %vm355_vm6, %v4532_v26  ;;  %3889 = vmatmul.mubr.msk.f32.gmra.mrb[40].mxu0 %vm553_vm2, %v4587_v54  ;;  %s4270_s18 = scalar_lea.vmem %s3129_s17, 2048  ;;  %p4275_p9 = scmp.lt.s32.totalorder %s3129_s17, %s3129_s17 }
 0x152   :  { %3859 = vmatprep.mubr.msk.f32.mxu1 %vm355_vm6, %v4548_v35  ;;  %3891 = vmatprep.mubr.msk.f32.mxu0 %vm553_vm2, %v4606_v2  ;;  %p4271_p8 = scmp.ne.s32.totalorder %s3129_s17, %s4270_s18  ;;  %p4276_p10 = scmp.lt.s32.totalorder %s4270_s18, %s4270_s18 }
 0x154   :  { %p4277_p11 = por %p4276_p10, %p4275_p9 }
 0x155   :  { %3860 = vmatmul.mubr.msk.f32.gmra.mrb[38].mxu1 %vm355_vm6, %v4546_v34  ;;  %3892 = vmatmul.mubr.msk.f32.gmra.mrb[42].mxu0 %vm553_vm2, %v4612_v3 }
 0x156   :  { %3862 = vmatprep.mubr.msk.f32.mxu1 %vm355_vm6, %v4573_v49  ;;  %3894 = vmatprep.mubr.msk.f32.mxu0 %vm553_vm2, %v4631_v6  ;;  %p4278_p12 = pnand %p4277_p11, %p4271_p8 }
 0x159   :  { %3863 = vmatmul.mubr.msk.f32.gmra.mrb[40].mxu1 %vm355_vm6, %v4570_v44  ;;  %3895 = vmatmul.mubr.msk.f32.gmra.mrb[44].mxu0 %vm553_vm2, %v4637_v22 }
 0x15a   :  { %3865 = vmatprep.mubr.msk.f32.mxu1 %vm355_vm6, %v4596_v61  ;;  %3897 = vmatprep.mubr.msk.f32.mxu0 %vm553_vm2, %v4658_v33 }
 0x15d   :  { %3866 = vmatmul.mubr.msk.f32.gmra.mrb[42].mxu1 %vm355_vm6, %v4598_v62  ;;  %3898 = vmatmul.mubr.msk.f32.gmra.mrb[46].mxu0 %vm553_vm2, %v4674_v40 }
 0x15e   :  { %3868 = vmatprep.mubr.msk.f32.mxu1 %vm355_vm6, %v4621_v14  ;;  %3932 = vmatprep.mubr.msk.f32.mxu0 %vm553_vm2, %v4447_v48 }
 0x161   :  { %3869 = vmatmul.mubr.msk.f32.gmra.mrb[44].mxu1 %vm355_vm6, %v4623_v16  ;;  %3933 = vmatmul.mubr.msk.f32.vlgmr.msra.gmra.mrb[48].mxu0 %vm553_vm2, %v4455_v52 }
 0x162   :  { %3871 = vmatprep.mubr.msk.f32.mxu1 %vm355_vm6, %v4646_v31  ;;  %3935 = vmatprep.mubr.msk.f32.mxu0 %vm553_vm2, %v4477_v4 }
 0x163   :  { %3987 = vmatpush3.msk.msra.mxu0 %vm602_vm0, %v1782_v1 }
 0x164   :  { %4042 = vmatprep.subr.msk.mxu0 %vm602_vm0, %v2114_v53 }
 0x165   :  { %3872 = vmatmul.mubr.msk.f32.gmra.mrb[46].mxu1 %vm355_vm6, %v4648_v32  ;;  %3936 = vmatmul.mubr.msk.f32.gmra.mrb[50].mxu0 %vm553_vm2, %v4485_v7 }
 0x166   :  { %3906 = vmatprep.mubr.msk.f32.mxu1 %vm355_vm6, %v4461_v57  ;;  %3938 = vmatprep.mubr.msk.f32.mxu0 %vm553_vm2, %v4526_v24 }
 0x169   :  { %3907 = vmatmul.mubr.msk.f32.vlgmr.msra.gmra.mrb[48].mxu1 %vm355_vm6, %v4496_v13  ;;  %3939 = vmatmul.mubr.msk.f32.gmra.mrb[52].mxu0 %vm553_vm2, %v4538_v28 }
 0x16a   :  { %4199 = vmatpush3.bf16.msra.mxu1 %v4196_v50  ;;  %3909 = vmatprep.mubr.msk.f32.mxu1 %vm355_vm6, %v4498_v15  ;;  %v2445_v50 = vld [vmem:[#allocation2 + $0xb0] sm:$0xf] }
 0x16b   :  { %3941 = vmatprep.mubr.msk.f32.mxu0 %vm553_vm2, %v4556_v37  ;;  %3960 = vmatprep.subr.msk.mxu1 %vm404_vm1, %v1781_v55 }
 0x16d   :  { %3910 = vmatmul.mubr.msk.f32.gmra.mrb[50].mxu1 %vm355_vm6, %v4515_v20  ;;  %3942 = vmatmul.mubr.msk.f32.gmra.mrb[54].mxu0 %vm553_vm2, %v4562_v39 }
 0x16e   :  { %v3766_v60 = vpop.f32.mrb[0].mxu1  ;;  %3912 = vmatprep.mubr.msk.f32.mxu1 %vm355_vm6, %v4519_v21  ;;  %3944 = vmatprep.mubr.msk.f32.mxu0 %vm553_vm2, %v4581_v51 }
 0x16f   :  { %v672_v63 = vpop.f32.mrb[1].mxu1  ;;  %3961 = vmatpush3.msk.msra.mxu1 %vm404_vm1, %v1781_v55  ;;  %v2776_v55 = vld [vmem:[#allocation2 + $0x78] sm:$0xff] }
 0x170   :  { %4201 = vmatprep.subr.bf16.mxu1 %v4200_v59 }
 0x171   :  { %3913 = vmatmul.mubr.msk.f32.gmra.mrb[52].mxu1 %vm355_vm6, %v4532_v26  ;;  %3945 = vmatmul.mubr.msk.f32.gmra.mrb[56].mxu0 %vm553_vm2, %v4587_v54 }
 0x172   :  { %3915 = vmatprep.mubr.msk.f32.mxu1 %vm355_vm6, %v4548_v35  ;;  %3947 = vmatprep.mubr.msk.f32.mxu0 %vm553_vm2, %v4606_v2 }
 0x175   :  { %3916 = vmatmul.mubr.msk.f32.gmra.mrb[54].mxu1 %vm355_vm6, %v4546_v34  ;;  %3948 = vmatmul.mubr.msk.f32.gmra.mrb[58].mxu0 %vm553_vm2, %v4612_v3 }
 0x176   :  { %3918 = vmatprep.mubr.msk.f32.mxu1 %vm355_vm6, %v4573_v49  ;;  %3950 = vmatprep.mubr.msk.f32.mxu0 %vm553_vm2, %v4631_v6 }
 0x179   :  { %3919 = vmatmul.mubr.msk.f32.gmra.mrb[56].mxu1 %vm355_vm6, %v4570_v44  ;;  %3951 = vmatmul.mubr.msk.f32.gmra.mrb[60].mxu0 %vm553_vm2, %v4637_v22 }
 0x17a   :  { %3921 = vmatprep.mubr.msk.f32.mxu1 %vm355_vm6, %v4596_v61  ;;  %3953 = vmatprep.mubr.msk.f32.mxu0 %vm553_vm2, %v4658_v33 }
 0x17d   :  { %3922 = vmatmul.mubr.msk.f32.gmra.mrb[58].mxu1 %vm355_vm6, %v4598_v62  ;;  %3954 = vmatmul.mubr.msk.f32.gmra.mrb[62].mxu0 %vm553_vm2, %v4674_v40 }
 0x17e   :  { %3924 = vmatprep.mubr.msk.f32.mxu1 %vm355_vm6, %v4621_v14  ;;  %3988 = vmatprep.mubr.msk.f32.mxu0 %vm553_vm2, %v4447_v48 }
 0x181   :  { %3925 = vmatmul.mubr.msk.f32.gmra.mrb[60].mxu1 %vm355_vm6, %v4623_v16  ;;  %3989 = vmatmul.mubr.msk.f32.vlgmr.msra.gmra.mrb[64].mxu0 %vm553_vm2, %v4455_v52 }
 0x182   :  { %3927 = vmatprep.mubr.msk.f32.mxu1 %vm355_vm6, %v4646_v31  ;;  %3991 = vmatprep.mubr.msk.f32.mxu0 %vm553_vm2, %v4477_v4 }
 0x183   :  { %4043 = vmatpush3.msk.msra.mxu0 %vm602_vm0, %v2114_v53  ;;  %v2775_v53 = vld [vmem:[#allocation2 + $0x38] sm:$0xff] }
 0x184   :  { %4098 = vmatprep.subr.msk.mxu0 %vm602_vm0, %v2446_v0  ;;  %v4208_v58 = vpack.c.bf16 %v2776_v55, %v2775_v53 }
 0x185   :  { %3928 = vmatmul.mubr.msk.f32.gmra.mrb[62].mxu1 %vm355_vm6, %v4648_v32  ;;  %3992 = vmatmul.mubr.msk.f32.gmra.mrb[66].mxu0 %vm553_vm2, %v4485_v7 }
 0x186   :  { %v3769_v5 = vpop.f32.mrb[2].mxu1  ;;  %3962 = vmatprep.mubr.msk.f32.mxu1 %vm355_vm6, %v4461_v57  ;;  %3994 = vmatprep.mubr.msk.f32.mxu0 %vm553_vm2, %v4526_v24 }
 0x187   :  { %v682_v9 = vpop.f32.mrb[3].mxu1 }
 0x189   :  { %3963 = vmatmul.mubr.msk.f32.vlgmr.msra.gmra.mrb[64].mxu1 %vm355_vm6, %v4496_v13  ;;  %3995 = vmatmul.mubr.msk.f32.gmra.mrb[68].mxu0 %vm553_vm2, %v4538_v28 }
 0x18a   :  { %4203 = vmatpush3.bf16.msra.mxu1 %v4200_v59  ;;  %3965 = vmatprep.mubr.msk.f32.mxu1 %vm355_vm6, %v4498_v15 }
 0x18b   :  { %3997 = vmatprep.mubr.msk.f32.mxu0 %vm553_vm2, %v4556_v37  ;;  %4016 = vmatprep.subr.msk.mxu1 %vm404_vm1, %v2113_v10 }
 0x18d   :  { %3966 = vmatmul.mubr.msk.f32.gmra.mrb[66].mxu1 %vm355_vm6, %v4515_v20  ;;  %3998 = vmatmul.mubr.msk.f32.gmra.mrb[70].mxu0 %vm553_vm2, %v4562_v39 }
 0x18e   :  { %3968 = vmatprep.mubr.msk.f32.mxu1 %vm355_vm6, %v4519_v21  ;;  %4000 = vmatprep.mubr.msk.f32.mxu0 %vm553_vm2, %v4581_v51 }
 0x18f   :  { %v3740_v19 = vpop.f32.mrb[0].mxu0  ;;  %4017 = vmatpush3.msk.msra.mxu1 %vm404_vm1, %v2113_v10 }
 0x190   :  { %v4916_v23 = vmul.f32 %v3766_v60, %v3740_v19  ;;  %v474_v25 = vpop.f32.mrb[1].mxu0  ;;  %4205 = vmatprep.subr.bf16.mxu1 %v4204_v18 }
 0x191   :  { %v4918_v27 = vmul.f32 %v672_v63, %v474_v25  ;;  %3969 = vmatmul.mubr.msk.f32.gmra.mrb[68].mxu1 %vm355_vm6, %v4532_v26  ;;  %4001 = vmatmul.mubr.msk.f32.gmra.mrb[72].mxu0 %vm553_vm2, %v4587_v54 }
 0x192   :  { %3971 = vmatprep.mubr.msk.f32.mxu1 %vm355_vm6, %v4548_v35  ;;  %4003 = vmatprep.mubr.msk.f32.mxu0 %vm553_vm2, %v4606_v2 }
 0x193   :  { %v3743_v29 = vpop.f32.mrb[2].mxu0 }
 0x194   :  { %v4928_v30 = vmul.f32 %v3769_v5, %v3743_v29  ;;  %v484_v8 = vpop.f32.mrb[3].mxu0 }
 0x195   :  { %v4930_v36 = vmul.f32 %v682_v9, %v484_v8  ;;  %3972 = vmatmul.mubr.msk.f32.gmra.mrb[70].mxu1 %vm355_vm6, %v4546_v34  ;;  %4004 = vmatmul.mubr.msk.f32.gmra.mrb[74].mxu0 %vm553_vm2, %v4612_v3 }
 0x196   :  { %3974 = vmatprep.mubr.msk.f32.mxu1 %vm355_vm6, %v4573_v49  ;;  %4006 = vmatprep.mubr.msk.f32.mxu0 %vm553_vm2, %v4631_v6 }
 0x197   :  { %v3746_v38 = vpop.f32.mrb[4].mxu0 }
 0x198   :  { %v494_v17 = vpop.f32.mrb[5].mxu0 }
 0x199   :  { %v3772_v43 = vpop.f32.mrb[4].mxu1  ;;  %3975 = vmatmul.mubr.msk.f32.gmra.mrb[72].mxu1 %vm355_vm6, %v4570_v44  ;;  %4007 = vmatmul.mubr.msk.f32.gmra.mrb[76].mxu0 %vm553_vm2, %v4637_v22 }
 0x19a   :  { %v4944_v47 = vmul.f32 %v3772_v43, %v3746_v38  ;;  %v692_v41 = vpop.f32.mrb[5].mxu1  ;;  %3977 = vmatprep.mubr.msk.f32.mxu1 %vm355_vm6, %v4596_v61  ;;  %4009 = vmatprep.mubr.msk.f32.mxu0 %vm553_vm2, %v4658_v33 }
 0x19b   :  { %v4950_v1 = vmul.f32 %v692_v41, %v494_v17 }
 0x19d   :  { %3978 = vmatmul.mubr.msk.f32.gmra.mrb[74].mxu1 %vm355_vm6, %v4598_v62  ;;  %4010 = vmatmul.mubr.msk.f32.gmra.mrb[78].mxu0 %vm553_vm2, %v4674_v40 }
 0x19e   :  { %3980 = vmatprep.mubr.msk.f32.mxu1 %vm355_vm6, %v4621_v14  ;;  %4044 = vmatprep.mubr.msk.f32.mxu0 %vm553_vm2, %v4447_v48 }
 0x1a1   :  { %3981 = vmatmul.mubr.msk.f32.gmra.mrb[76].mxu1 %vm355_vm6, %v4623_v16  ;;  %4045 = vmatmul.mubr.msk.f32.vlgmr.msra.gmra.mrb[80].mxu0 %vm553_vm2, %v4455_v52 }
 0x1a2   :  { %3983 = vmatprep.mubr.msk.f32.mxu1 %vm355_vm6, %v4646_v31  ;;  %4047 = vmatprep.mubr.msk.f32.mxu0 %vm553_vm2, %v4477_v4 }
 0x1a3   :  { %4099 = vmatpush3.msk.msra.mxu0 %vm602_vm0, %v2446_v0 }
 0x1a4   :  { %v3749_v45 = vpop.f32.mrb[6].mxu0  ;;  %4154 = vmatprep.subr.msk.mxu0 %vm602_vm0, %v2778_v42 }
 0x1a5   :  { %3984 = vmatmul.mubr.msk.f32.gmra.mrb[78].mxu1 %vm355_vm6, %v4648_v32  ;;  %4048 = vmatmul.mubr.msk.f32.gmra.mrb[82].mxu0 %vm553_vm2, %v4485_v7  ;;  %v504_v46 = vpop.f32.mrb[7].mxu0 }
 0x1a6   :  { %4018 = vmatprep.mubr.msk.f32.mxu1 %vm355_vm6, %v4461_v57  ;;  %4050 = vmatprep.mubr.msk.f32.mxu0 %vm553_vm2, %v4526_v24 }
 0x1a9   :  { %4019 = vmatmul.mubr.msk.f32.vlgmr.msra.gmra.mrb[80].mxu1 %vm355_vm6, %v4496_v13  ;;  %4051 = vmatmul.mubr.msk.f32.gmra.mrb[84].mxu0 %vm553_vm2, %v4538_v28 }
 0x1aa   :  { %4207 = vmatpush3.bf16.msra.mxu1 %v4204_v18  ;;  %4021 = vmatprep.mubr.msk.f32.mxu1 %vm355_vm6, %v4498_v15  ;;  %v2777_v18 = vld [vmem:[#allocation2 + $0xb8] sm:$0xf] }
 0x1ab   :  { %4053 = vmatprep.mubr.msk.f32.mxu0 %vm553_vm2, %v4556_v37  ;;  %4072 = vmatprep.subr.msk.mxu1 %vm404_vm1, %v2445_v50 }
 0x1ac   :  { %v3775_v56 = vpop.f32.mrb[6].mxu1 }
 0x1ad   :  { %v4990_v59 = vmul.f32 %v3775_v56, %v3749_v45  ;;  %v702_v60 = vpop.f32.mrb[7].mxu1  ;;  %4022 = vmatmul.mubr.msk.f32.gmra.mrb[82].mxu1 %vm355_vm6, %v4515_v20  ;;  %4054 = vmatmul.mubr.msk.f32.gmra.mrb[86].mxu0 %vm553_vm2, %v4562_v39 }
 0x1ae   :  { %v4996_v63 = vmul.f32 %v702_v60, %v504_v46  ;;  %4024 = vmatprep.mubr.msk.f32.mxu1 %vm355_vm6, %v4519_v21  ;;  %4056 = vmatprep.mubr.msk.f32.mxu0 %vm553_vm2, %v4581_v51 }
 0x1af   :  { %4073 = vmatpush3.msk.msra.mxu1 %vm404_vm1, %v2445_v50 }
 0x1b0   :  { %4209 = vmatprep.subr.bf16.mxu1 %v4208_v58 }
 0x1b1   :  { %4025 = vmatmul.mubr.msk.f32.gmra.mrb[84].mxu1 %vm355_vm6, %v4532_v26  ;;  %4057 = vmatmul.mubr.msk.f32.gmra.mrb[88].mxu0 %vm553_vm2, %v4587_v54 }
 0x1b2   :  { %4027 = vmatprep.mubr.msk.f32.mxu1 %vm355_vm6, %v4548_v35  ;;  %4059 = vmatprep.mubr.msk.f32.mxu0 %vm553_vm2, %v4606_v2 }
 0x1b5   :  { %4028 = vmatmul.mubr.msk.f32.gmra.mrb[86].mxu1 %vm355_vm6, %v4546_v34  ;;  %4060 = vmatmul.mubr.msk.f32.gmra.mrb[90].mxu0 %vm553_vm2, %v4612_v3 }
 0x1b6   :  { %4030 = vmatprep.mubr.msk.f32.mxu1 %vm355_vm6, %v4573_v49  ;;  %4062 = vmatprep.mubr.msk.f32.mxu0 %vm553_vm2, %v4631_v6 }
 0x1b7   :  { %v3752_v0 = vpop.f32.mrb[8].mxu0 }
 0x1b8   :  { %v514_v5 = vpop.f32.mrb[9].mxu0 }
 0x1b9   :  { %4031 = vmatmul.mubr.msk.f32.gmra.mrb[88].mxu1 %vm355_vm6, %v4570_v44  ;;  %4063 = vmatmul.mubr.msk.f32.gmra.mrb[92].mxu0 %vm553_vm2, %v4637_v22 }
 0x1ba   :  { %4033 = vmatprep.mubr.msk.f32.mxu1 %vm355_vm6, %v4596_v61  ;;  %4065 = vmatprep.mubr.msk.f32.mxu0 %vm553_vm2, %v4658_v33 }
 0x1bd   :  { %4034 = vmatmul.mubr.msk.f32.gmra.mrb[90].mxu1 %vm355_vm6, %v4598_v62  ;;  %4066 = vmatmul.mubr.msk.f32.gmra.mrb[94].mxu0 %vm553_vm2, %v4674_v40 }
 0x1be   :  { %4036 = vmatprep.mubr.msk.f32.mxu1 %vm355_vm6, %v4621_v14  ;;  %4100 = vmatprep.mubr.msk.f32.mxu0 %vm553_vm2, %v4447_v48 }
 0x1bf   :  { %v3778_v9 = vpop.f32.mrb[8].mxu1 }
 0x1c0   :  { %v5035_v10 = vmul.f32 %v3778_v9, %v3752_v0  ;;  %v712_v11 = vpop.f32.mrb[9].mxu1 }
 0x1c1   :  { %v5037_v12 = vmul.f32 %v712_v11, %v514_v5  ;;  %4037 = vmatmul.mubr.msk.f32.gmra.mrb[92].mxu1 %vm355_vm6, %v4623_v16  ;;  %4101 = vmatmul.mubr.msk.f32.vlgmr.msra.gmra.mrb[96].mxu0 %vm553_vm2, %v4455_v52 }
 0x1c2   :  { %4039 = vmatprep.mubr.msk.f32.mxu1 %vm355_vm6, %v4646_v31  ;;  %4103 = vmatprep.mubr.msk.f32.mxu0 %vm553_vm2, %v4477_v4 }
 0x1c3   :  { %4155 = vmatpush3.msk.msra.mxu0 %vm602_vm0, %v2778_v42 }
 0x1c5   :  { %4040 = vmatmul.mubr.msk.f32.gmra.mrb[94].mxu1 %vm355_vm6, %v4648_v32  ;;  %4104 = vmatmul.mubr.msk.f32.gmra.mrb[98].mxu0 %vm553_vm2, %v4485_v7 }
 0x1c6   :  { %4074 = vmatprep.mubr.msk.f32.mxu1 %vm355_vm6, %v4461_v57  ;;  %4106 = vmatprep.mubr.msk.f32.mxu0 %vm553_vm2, %v4526_v24 }
 0x1c9   :  { %4075 = vmatmul.mubr.msk.f32.vlgmr.msra.gmra.mrb[96].mxu1 %vm355_vm6, %v4496_v13  ;;  %4107 = vmatmul.mubr.msk.f32.gmra.mrb[100].mxu0 %vm553_vm2, %v4538_v28 }
 0x1ca   :  { %4211 = vmatpush3.bf16.msra.mxu1 %v4208_v58  ;;  %v3755_v19 = vpop.f32.mrb[10].mxu0  ;;  %4077 = vmatprep.mubr.msk.f32.mxu1 %vm355_vm6, %v4498_v15 }
 0x1cb   :  { %4109 = vmatprep.mubr.msk.f32.mxu0 %vm553_vm2, %v4556_v37  ;;  %v524_v25 = vpop.f32.mrb[11].mxu0  ;;  %4128 = vmatprep.subr.msk.mxu1 %vm404_vm1, %v2777_v18 }
 0x1cd   :  { %4078 = vmatmul.mubr.msk.f32.gmra.mrb[98].mxu1 %vm355_vm6, %v4515_v20  ;;  %4110 = vmatmul.mubr.msk.f32.gmra.mrb[102].mxu0 %vm553_vm2, %v4562_v39 }
 0x1ce   :  { %4080 = vmatprep.mubr.msk.f32.mxu1 %vm355_vm6, %v4519_v21  ;;  %4112 = vmatprep.mubr.msk.f32.mxu0 %vm553_vm2, %v4581_v51 }
 0x1cf   :  { %4129 = vmatpush3.msk.msra.mxu1 %vm404_vm1, %v2777_v18 }
 0x1d1   :  { %4081 = vmatmul.mubr.msk.f32.gmra.mrb[100].mxu1 %vm355_vm6, %v4532_v26  ;;  %4113 = vmatmul.mubr.msk.f32.gmra.mrb[104].mxu0 %vm553_vm2, %v4587_v54 }
 0x1d2   :  { %v3781_v29 = vpop.f32.mrb[10].mxu1  ;;  %4083 = vmatprep.mubr.msk.f32.mxu1 %vm355_vm6, %v4548_v35  ;;  %4115 = vmatprep.mubr.msk.f32.mxu0 %vm553_vm2, %v4606_v2 }
 0x1d3   :  { %v5082_v8 = vmul.f32 %v3781_v29, %v3755_v19  ;;  %v722_v38 = vpop.f32.mrb[11].mxu1 }
 0x1d4   :  { %v5084_v17 = vmul.f32 %v722_v38, %v524_v25 }
 0x1d5   :  { %4084 = vmatmul.mubr.msk.f32.gmra.mrb[102].mxu1 %vm355_vm6, %v4546_v34  ;;  %4116 = vmatmul.mubr.msk.f32.gmra.mrb[106].mxu0 %vm553_vm2, %v4612_v3 }
 0x1d6   :  { %4086 = vmatprep.mubr.msk.f32.mxu1 %vm355_vm6, %v4573_v49  ;;  %4118 = vmatprep.mubr.msk.f32.mxu0 %vm553_vm2, %v4631_v6 }
 0x1d9   :  { %4087 = vmatmul.mubr.msk.f32.gmra.mrb[104].mxu1 %vm355_vm6, %v4570_v44  ;;  %4119 = vmatmul.mubr.msk.f32.gmra.mrb[108].mxu0 %vm553_vm2, %v4637_v22 }
 0x1da   :  { %4089 = vmatprep.mubr.msk.f32.mxu1 %vm355_vm6, %v4596_v61  ;;  %4121 = vmatprep.mubr.msk.f32.mxu0 %vm553_vm2, %v4658_v33 }
 0x1dd   :  { %v3758_v43 = vpop.f32.mrb[12].mxu0  ;;  %4090 = vmatmul.mubr.msk.f32.gmra.mrb[106].mxu1 %vm355_vm6, %v4598_v62  ;;  %4122 = vmatmul.mubr.msk.f32.gmra.mrb[110].mxu0 %vm553_vm2, %v4674_v40 }
 0x1de   :  { %v534_v41 = vpop.f32.mrb[13].mxu0  ;;  %4092 = vmatprep.mubr.msk.f32.mxu1 %vm355_vm6, %v4621_v14  ;;  %4156 = vmatprep.mubr.msk.f32.mxu0 %vm553_vm2, %v4447_v48 }
 0x1e1   :  { %4093 = vmatmul.mubr.msk.f32.gmra.mrb[108].mxu1 %vm355_vm6, %v4623_v16  ;;  %4157 = vmatmul.mubr.msk.f32.vlgmr.msra.gmra.mrb[112].mxu0 %vm553_vm2, %v4455_v52 }
 0x1e2   :  { %4095 = vmatprep.mubr.msk.f32.mxu1 %vm355_vm6, %v4646_v31  ;;  %4159 = vmatprep.mubr.msk.f32.mxu0 %vm553_vm2, %v4477_v4 }
 0x1e5   :  { %v3784_v42 = vpop.f32.mrb[12].mxu1  ;;  %4096 = vmatmul.mubr.msk.f32.gmra.mrb[110].mxu1 %vm355_vm6, %v4648_v32  ;;  %4160 = vmatmul.mubr.msk.f32.gmra.mrb[114].mxu0 %vm553_vm2, %v4485_v7 }
 0x1e6   :  { %v5122_v48 = vmul.f32 %v3784_v42, %v3758_v43  ;;  %v732_v45 = vpop.f32.mrb[13].mxu1  ;;  %4130 = vmatprep.mubr.msk.f32.mxu1 %vm355_vm6, %v4461_v57  ;;  %4162 = vmatprep.mubr.msk.f32.mxu0 %vm553_vm2, %v4526_v24 }
 0x1e7   :  { %v5128_v52 = vmul.f32 %v732_v45, %v534_v41 }
 0x1e9   :  { %4131 = vmatmul.mubr.msk.f32.vlgmr.msra.gmra.mrb[112].mxu1 %vm355_vm6, %v4496_v13  ;;  %4163 = vmatmul.mubr.msk.f32.gmra.mrb[116].mxu0 %vm553_vm2, %v4538_v28 }
 0x1ea   :  { %4133 = vmatprep.mubr.msk.f32.mxu1 %vm355_vm6, %v4498_v15  ;;  %4165 = vmatprep.mubr.msk.f32.mxu0 %vm553_vm2, %v4556_v37 }
 0x1ed   :  { %4134 = vmatmul.mubr.msk.f32.gmra.mrb[114].mxu1 %vm355_vm6, %v4515_v20  ;;  %4166 = vmatmul.mubr.msk.f32.gmra.mrb[118].mxu0 %vm553_vm2, %v4562_v39 }
 0x1ee   :  { %4136 = vmatprep.mubr.msk.f32.mxu1 %vm355_vm6, %v4519_v21  ;;  %4168 = vmatprep.mubr.msk.f32.mxu0 %vm553_vm2, %v4581_v51 }
 0x1f0   :  { %v3761_v57 = vpop.f32.mrb[14].mxu0 }
 0x1f1   :  { %v544_v4 = vpop.f32.mrb[15].mxu0  ;;  %4137 = vmatmul.mubr.msk.f32.gmra.mrb[116].mxu1 %vm355_vm6, %v4532_v26  ;;  %4169 = vmatmul.mubr.msk.f32.gmra.mrb[120].mxu0 %vm553_vm2, %v4587_v54 }
 0x1f2   :  { %4139 = vmatprep.mubr.msk.f32.mxu1 %vm355_vm6, %v4548_v35  ;;  %4171 = vmatprep.mubr.msk.f32.mxu0 %vm553_vm2, %v4606_v2 }
 0x1f4   :  { %v3822_v7 = vpop.f32.mrb[16].mxu0 }
 0x1f5   :  { %v1004_v13 = vpop.f32.mrb[17].mxu0  ;;  %4140 = vmatmul.mubr.msk.f32.gmra.mrb[118].mxu1 %vm355_vm6, %v4546_v34  ;;  %4172 = vmatmul.mubr.msk.f32.gmra.mrb[122].mxu0 %vm553_vm2, %v4612_v3 }
 0x1f6   :  { %4142 = vmatprep.mubr.msk.f32.mxu1 %vm355_vm6, %v4573_v49  ;;  %4174 = vmatprep.mubr.msk.f32.mxu0 %vm553_vm2, %v4631_v6 }
 0x1f8   :  { %v3787_v15 = vpop.f32.mrb[14].mxu1  ;;  %v3825_v20 = vpop.f32.mrb[18].mxu0 }
 0x1f9   :  { %v5162_v21 = vmul.f32 %v3787_v15, %v3761_v57  ;;  %v742_v24 = vpop.f32.mrb[15].mxu1  ;;  %v1014_v26 = vpop.f32.mrb[19].mxu0  ;;  %4143 = vmatmul.mubr.msk.f32.gmra.mrb[120].mxu1 %vm355_vm6, %v4570_v44  ;;  %4175 = vmatmul.mubr.msk.f32.gmra.mrb[124].mxu0 %vm553_vm2, %v4637_v22 }
 0x1fa   :  { %v5168_v28 = vmul.f32 %v742_v24, %v544_v4  ;;  %4145 = vmatprep.mubr.msk.f32.mxu1 %vm355_vm6, %v4596_v61  ;;  %4177 = vmatprep.mubr.msk.f32.mxu0 %vm553_vm2, %v4658_v33 }
 0x1fc   :  { %v3796_v34 = vpop.f32.mrb[16].mxu1  ;;  %v3828_v35 = vpop.f32.mrb[20].mxu0 }
 0x1fd   :  { %v1084_v37 = vmul.f32 %v3822_v7, %v3796_v34  ;;  %v856_v39 = vpop.f32.mrb[17].mxu1  ;;  %v1024_v49 = vpop.f32.mrb[21].mxu0  ;;  %4146 = vmatmul.mubr.msk.f32.gmra.mrb[122].mxu1 %vm355_vm6, %v4598_v62  ;;  %4178 = vmatmul.mubr.msk.f32.gmra.mrb[126].mxu0 %vm553_vm2, %v4674_v40 }
 0x1fe   :  { %v1083_v44 = vmul.f32 %v1004_v13, %v856_v39  ;;  %4148 = vmatprep.mubr.msk.f32.mxu1 %vm355_vm6, %v4621_v14 }
 0x1ff   :  { %v5181_v51 = vadd.f32 %v1084_v37, %v4916_v23 }
 0x200   :  { %v5184_v54 = vadd.f32 %v1083_v44, %v4918_v27  ;;  %v3799_v61 = vpop.f32.mrb[18].mxu1  ;;  %v3831_v2 = vpop.f32.mrb[22].mxu0 }
 0x201   :  { %v1086_v3 = vmul.f32 %v3825_v20, %v3799_v61  ;;  %v866_v6 = vpop.f32.mrb[19].mxu1  ;;  %v1034_v22 = vpop.f32.mrb[23].mxu0  ;;  %4149 = vmatmul.mubr.msk.f32.gmra.mrb[124].mxu1 %vm355_vm6, %v4623_v16 }
 0x202   :  { %v1085_v62 = vmul.f32 %v1014_v26, %v866_v6  ;;  %4151 = vmatprep.mubr.msk.f32.mxu1 %vm355_vm6, %v4646_v31 }
 0x203   :  { %v5191_v14 = vadd.f32 %v1086_v3, %v4928_v30 }
 0x204   :  { %v5194_v33 = vadd.f32 %v1085_v62, %v4930_v36  ;;  %v3802_v40 = vpop.f32.mrb[20].mxu1  ;;  %v3834_v23 = vpop.f32.mrb[24].mxu0 }
 0x205   :  { %v1088_v27 = vmul.f32 %v3828_v35, %v3802_v40  ;;  %v876_v46 = vpop.f32.mrb[21].mxu1  ;;  %v1044_v50 = vpop.f32.mrb[25].mxu0  ;;  %4152 = vmatmul.mubr.msk.f32.gmra.mrb[126].mxu1 %vm355_vm6, %v4648_v32 }
 0x206   :  { %v1087_v53 = vmul.f32 %v1024_v49, %v876_v46 }
 0x207   :  { %v5199_v16 = vadd.f32 %v1088_v27, %v4944_v47 }
 0x208   :  { %v5202_v31 = vadd.f32 %v1087_v53, %v4950_v1  ;;  %v3805_v30 = vpop.f32.mrb[22].mxu1  ;;  %v3837_v55 = vpop.f32.mrb[26].mxu0 }
 0x209   :  { %v1090_v56 = vmul.f32 %v3831_v2, %v3805_v30  ;;  %v886_v36 = vpop.f32.mrb[23].mxu1  ;;  %v1054_v58 = vpop.f32.mrb[27].mxu0 }
 0x20a   :  { %v1089_v60 = vmul.f32 %v1034_v22, %v886_v36 }
 0x20b   :  { %v5205_v0 = vadd.f32 %v1090_v56, %v4990_v59 }
 0x20c   :  { %v5208_v5 = vadd.f32 %v1089_v60, %v4996_v63  ;;  %v3808_v32 = vpop.f32.mrb[24].mxu1  ;;  %v3840_v9 = vpop.f32.mrb[28].mxu0 }
 0x20d   :  { %v1092_v11 = vmul.f32 %v3834_v23, %v3808_v32  ;;  %v896_v47 = vpop.f32.mrb[25].mxu1  ;;  %v1064_v18 = vpop.f32.mrb[29].mxu0 }
 0x20e   :  { %v1091_v19 = vmul.f32 %v1044_v50, %v896_v47 }
 0x20f   :  { %v5211_v1 = vadd.f32 %v1092_v11, %v5035_v10 }
 0x210   :  { %v5214_v25 = vadd.f32 %v1091_v19, %v5037_v12  ;;  %v3811_v29 = vpop.f32.mrb[26].mxu1  ;;  %v3843_v38 = vpop.f32.mrb[30].mxu0 }
 0x211   :  { %v1094_v43 = vmul.f32 %v3837_v55, %v3811_v29  ;;  %v906_v59 = vpop.f32.mrb[27].mxu1  ;;  %v1074_v41 = vpop.f32.mrb[31].mxu0 }
 0x212   :  { %v1093_v42 = vmul.f32 %v1054_v58, %v906_v59 }
 0x213   :  { %v5217_v63 = vadd.f32 %v1094_v43, %v5082_v8 }
 0x214   :  { %v5220_v45 = vadd.f32 %v1093_v42, %v5084_v17  ;;  %v3814_v57 = vpop.f32.mrb[28].mxu1  ;;  %v3878_v4 = vpop.f32.mrb[32].mxu0 }
 0x215   :  { %v1096_v7 = vmul.f32 %v3840_v9, %v3814_v57  ;;  %v916_v10 = vpop.f32.mrb[29].mxu1  ;;  %v1336_v13 = vpop.f32.mrb[33].mxu0 }
 0x216   :  { %v1095_v15 = vmul.f32 %v1064_v18, %v916_v10 }
 0x217   :  { %v5223_v12 = vadd.f32 %v1096_v7, %v5122_v48 }
 0x218   :  { %v5226_v20 = vadd.f32 %v1095_v15, %v5128_v52  ;;  %v3817_v24 = vpop.f32.mrb[30].mxu1  ;;  %v3881_v26 = vpop.f32.mrb[34].mxu0 }
 0x219   :  { %v1098_v34 = vmul.f32 %v3843_v38, %v3817_v24  ;;  %v926_v8 = vpop.f32.mrb[31].mxu1  ;;  %v1346_v35 = vpop.f32.mrb[35].mxu0 }
 0x21a   :  { %v1097_v37 = vmul.f32 %v1074_v41, %v926_v8 }
 0x21b   :  { %v5229_v17 = vadd.f32 %v1098_v34, %v5162_v21 }
 0x21c   :  { %v5232_v39 = vadd.f32 %v1097_v37, %v5168_v28  ;;  %v3852_v49 = vpop.f32.mrb[32].mxu1  ;;  %v3884_v44 = vpop.f32.mrb[36].mxu0 }
 0x21d   :  { %v1416_v61 = vmul.f32 %v3878_v4, %v3852_v49  ;;  %v1188_v48 = vpop.f32.mrb[33].mxu1  ;;  %v1356_v2 = vpop.f32.mrb[37].mxu0 }
 0x21e   :  { %v1415_v3 = vmul.f32 %v1336_v13, %v1188_v48 }
 0x21f   :  { %v5235_v52 = vadd.f32 %v1416_v61, %v5181_v51 }
 0x220   :  { %v5238_v6 = vadd.f32 %v1415_v3, %v5184_v54  ;;  %v3855_v22 = vpop.f32.mrb[34].mxu1  ;;  %v3887_v62 = vpop.f32.mrb[38].mxu0 }
 0x221   :  { %v1418_v40 = vmul.f32 %v3881_v26, %v3855_v22  ;;  %v1198_v21 = vpop.f32.mrb[35].mxu1  ;;  %v1366_v23 = vpop.f32.mrb[39].mxu0 }
 0x222   :  { %v1417_v27 = vmul.f32 %v1346_v35, %v1198_v21 }
 0x223   :  { %v5241_v28 = vadd.f32 %v1418_v40, %v5191_v14 }
 0x224   :  { %v5244_v46 = vadd.f32 %v1417_v27, %v5194_v33  ;;  %v3858_v50 = vpop.f32.mrb[36].mxu1  ;;  %v3890_v53 = vpop.f32.mrb[40].mxu0 }
 0x225   :  { %v1420_v30 = vmul.f32 %v3884_v44, %v3858_v50  ;;  %v1208_v51 = vpop.f32.mrb[37].mxu1  ;;  %v1376_v55 = vpop.f32.mrb[41].mxu0 }
 0x226   :  { %v1419_v56 = vmul.f32 %v1356_v2, %v1208_v51 }
 0x227   :  { %v5247_v54 = vadd.f32 %v1420_v30, %v5199_v16 }
 0x228   :  { %v5250_v36 = vadd.f32 %v1419_v56, %v5202_v31  ;;  %v3861_v58 = vpop.f32.mrb[38].mxu1  ;;  %v3893_v60 = vpop.f32.mrb[42].mxu0 }
 0x229   :  { %v1422_v32 = vmul.f32 %v3887_v62, %v3861_v58  ;;  %v1218_v14 = vpop.f32.mrb[39].mxu1  ;;  %v1386_v9 = vpop.f32.mrb[43].mxu0 }
 0x22a   :  { %v1421_v11 = vmul.f32 %v1366_v23, %v1218_v14 }
 0x22b   :  { %v5253_v33 = vadd.f32 %v1422_v32, %v5205_v0 }
 0x22c   :  { %v5256_v47 = vadd.f32 %v1421_v11, %v5208_v5  ;;  %v3864_v18 = vpop.f32.mrb[40].mxu1  ;;  %v3896_v19 = vpop.f32.mrb[44].mxu0 }
 0x22d   :  { %v1424_v29 = vmul.f32 %v3890_v53, %v3864_v18  ;;  %v1228_v16 = vpop.f32.mrb[41].mxu1  ;;  %v1396_v38 = vpop.f32.mrb[45].mxu0 }
 0x22e   :  { %v1423_v43 = vmul.f32 %v1376_v55, %v1228_v16 }
 0x22f   :  { %v5259_v31 = vadd.f32 %v1424_v29, %v5211_v1 }
 0x230   :  { %v5262_v59 = vadd.f32 %v1423_v43, %v5214_v25  ;;  %v3867_v41 = vpop.f32.mrb[42].mxu1  ;;  %v3899_v42 = vpop.f32.mrb[46].mxu0 }
 0x231   :  { %v1426_v57 = vmul.f32 %v3893_v60, %v3867_v41  ;;  %v1238_v0 = vpop.f32.mrb[43].mxu1  ;;  %v1406_v4 = vpop.f32.mrb[47].mxu0 }
 0x232   :  { %v1425_v7 = vmul.f32 %v1386_v9, %v1238_v0 }
 0x233   :  { %v5265_v5 = vadd.f32 %v1426_v57, %v5217_v63 }
 0x234   :  { %v5268_v10 = vadd.f32 %v1425_v7, %v5220_v45  ;;  %v3870_v13 = vpop.f32.mrb[44].mxu1  ;;  %v3934_v15 = vpop.f32.mrb[48].mxu0 }
 0x235   :  { %v1428_v24 = vmul.f32 %v3896_v19, %v3870_v13  ;;  %v1248_v1 = vpop.f32.mrb[45].mxu1  ;;  %v1668_v26 = vpop.f32.mrb[49].mxu0 }
 0x236   :  { %v1427_v34 = vmul.f32 %v1396_v38, %v1248_v1 }
 0x237   :  { %v5271_v25 = vadd.f32 %v1428_v24, %v5223_v12 }
 0x238   :  { %v5274_v8 = vadd.f32 %v1427_v34, %v5226_v20  ;;  %v3873_v35 = vpop.f32.mrb[46].mxu1  ;;  %v3937_v37 = vpop.f32.mrb[50].mxu0 }
 0x239   :  { %v1430_v49 = vmul.f32 %v3899_v42, %v3873_v35  ;;  %v1258_v63 = vpop.f32.mrb[47].mxu1  ;;  %v1678_v44 = vpop.f32.mrb[51].mxu0 }
 0x23a   :  { %v1429_v61 = vmul.f32 %v1406_v4, %v1258_v63 }
 0x23b   :  { %v5277_v45 = vadd.f32 %v1430_v49, %v5229_v17 }
 0x23c   :  { %v5280_v48 = vadd.f32 %v1429_v61, %v5232_v39  ;;  %v3908_v2 = vpop.f32.mrb[48].mxu1  ;;  %v3940_v3 = vpop.f32.mrb[52].mxu0 }
 0x23d   :  { %v1748_v22 = vmul.f32 %v3934_v15, %v3908_v2  ;;  %v1520_v12 = vpop.f32.mrb[49].mxu1  ;;  %v1688_v62 = vpop.f32.mrb[53].mxu0 }
 0x23e   :  { %v1747_v40 = vmul.f32 %v1668_v26, %v1520_v12 }
 0x23f   :  { %v5283_v20 = vadd.f32 %v1748_v22, %v5235_v52 }
 0x240   :  { %v5286_v21 = vadd.f32 %v1747_v40, %v5238_v6  ;;  %v3911_v23 = vpop.f32.mrb[50].mxu1  ;;  %v3943_v27 = vpop.f32.mrb[54].mxu0 }
 0x241   :  { %v1750_v50 = vmul.f32 %v3937_v37, %v3911_v23  ;;  %v1530_v17 = vpop.f32.mrb[51].mxu1  ;;  %v1698_v53 = vpop.f32.mrb[55].mxu0 }
 0x242   :  { %v1749_v30 = vmul.f32 %v1678_v44, %v1530_v17 }
 0x243   :  { %v5289_v39 = vadd.f32 %v1750_v50, %v5241_v28 }
 0x244   :  { %v5292_v51 = vadd.f32 %v1749_v30, %v5244_v46  ;;  %v3914_v55 = vpop.f32.mrb[52].mxu1  ;;  %v3946_v56 = vpop.f32.mrb[56].mxu0 }
 0x245   :  { %v1752_v58 = vmul.f32 %v3940_v3, %v3914_v55  ;;  %v1540_v52 = vpop.f32.mrb[53].mxu1  ;;  %v1708_v60 = vpop.f32.mrb[57].mxu0 }
 0x246   :  { %v1751_v32 = vmul.f32 %v1688_v62, %v1540_v52 }
 0x247   :  { %v5295_v6 = vadd.f32 %v1752_v58, %v5247_v54 }
 0x248   :  { %v5298_v14 = vadd.f32 %v1751_v32, %v5250_v36  ;;  %v3917_v9 = vpop.f32.mrb[54].mxu1  ;;  %v3949_v11 = vpop.f32.mrb[58].mxu0 }
 0x249   :  { %v1754_v18 = vmul.f32 %v3943_v27, %v3917_v9  ;;  %v1550_v28 = vpop.f32.mrb[55].mxu1  ;;  %v1718_v19 = vpop.f32.mrb[59].mxu0 }
 0x24a   :  { %v1753_v29 = vmul.f32 %v1698_v53, %v1550_v28 }
 0x24b   :  { %v5301_v46 = vadd.f32 %v1754_v18, %v5253_v33 }
 0x24c   :  { %v5304_v16 = vadd.f32 %v1753_v29, %v5256_v47  ;;  %v3920_v38 = vpop.f32.mrb[56].mxu1  ;;  %v3952_v43 = vpop.f32.mrb[60].mxu0 }
 0x24d   :  { %v1756_v41 = vmul.f32 %v3946_v56, %v3920_v38  ;;  %v1560_v54 = vpop.f32.mrb[57].mxu1  ;;  %v1728_v42 = vpop.f32.mrb[61].mxu0 }
 0x24e   :  { %v1755_v57 = vmul.f32 %v1708_v60, %v1560_v54 }
 0x24f   :  { %v5307_v36 = vadd.f32 %v1756_v41, %v5259_v31 }
 0x250   :  { %v5310_v0 = vadd.f32 %v1755_v57, %v5262_v59  ;;  %v3923_v4 = vpop.f32.mrb[58].mxu1  ;;  %v3955_v7 = vpop.f32.mrb[62].mxu0 }
 0x251   :  { %v1758_v13 = vmul.f32 %v3949_v11, %v3923_v4  ;;  %v1570_v33 = vpop.f32.mrb[59].mxu1  ;;  %v1738_v15 = vpop.f32.mrb[63].mxu0 }
 0x252   :  { %v1757_v24 = vmul.f32 %v1718_v19, %v1570_v33 }
 0x253   :  { %v5313_v47 = vadd.f32 %v1758_v13, %v5265_v5 }
 0x254   :  { %v5316_v1 = vadd.f32 %v1757_v24, %v5268_v10  ;;  %v3926_v26 = vpop.f32.mrb[60].mxu1  ;;  %v3990_v34 = vpop.f32.mrb[64].mxu0 }
 0x255   :  { %v1760_v35 = vmul.f32 %v3952_v43, %v3926_v26  ;;  %v1580_v31 = vpop.f32.mrb[61].mxu1  ;;  %v2000_v37 = vpop.f32.mrb[65].mxu0 }
 0x256   :  { %v1759_v49 = vmul.f32 %v1728_v42, %v1580_v31 }
 0x257   :  { %v5319_v59 = vadd.f32 %v1760_v35, %v5271_v25 }
 0x258   :  { %v5322_v63 = vadd.f32 %v1759_v49, %v5274_v8  ;;  %v3929_v44 = vpop.f32.mrb[62].mxu1  ;;  %v3993_v61 = vpop.f32.mrb[66].mxu0 }
 0x259   :  { %v1762_v2 = vmul.f32 %v3955_v7, %v3929_v44  ;;  %v1590_v5 = vpop.f32.mrb[63].mxu1  ;;  %v2010_v3 = vpop.f32.mrb[67].mxu0 }
 0x25a   :  { %v1761_v22 = vmul.f32 %v1738_v15, %v1590_v5 }
 0x25b   :  { %v5325_v10 = vadd.f32 %v1762_v2, %v5277_v45 }
 0x25c   :  { %v5328_v12 = vadd.f32 %v1761_v22, %v5280_v48  ;;  %v3964_v62 = vpop.f32.mrb[64].mxu1  ;;  %v3996_v40 = vpop.f32.mrb[68].mxu0 }
 0x25d   :  { %v2080_v23 = vmul.f32 %v3990_v34, %v3964_v62  ;;  %v1852_v25 = vpop.f32.mrb[65].mxu1  ;;  %v2020_v27 = vpop.f32.mrb[69].mxu0 }
 0x25e   :  { %v2079_v50 = vmul.f32 %v2000_v37, %v1852_v25 }
 0x25f   :  { %v5331_v8 = vadd.f32 %v2080_v23, %v5283_v20 }
 0x260   :  { %v5334_v17 = vadd.f32 %v2079_v50, %v5286_v21  ;;  %v3967_v53 = vpop.f32.mrb[66].mxu1  ;;  %v3999_v30 = vpop.f32.mrb[70].mxu0 }
 0x261   :  { %v2082_v55 = vmul.f32 %v3993_v61, %v3967_v53  ;;  %v1862_v45 = vpop.f32.mrb[67].mxu1  ;;  %v2030_v56 = vpop.f32.mrb[71].mxu0 }
 0x262   :  { %v2081_v58 = vmul.f32 %v2010_v3, %v1862_v45 }
 0x263   :  { %v5337_v48 = vadd.f32 %v2082_v55, %v5289_v39 }
 0x264   :  { %v5340_v52 = vadd.f32 %v2081_v58, %v5292_v51  ;;  %v3970_v60 = vpop.f32.mrb[68].mxu1  ;;  %v4002_v32 = vpop.f32.mrb[72].mxu0 }
 0x265   :  { %v2084_v9 = vmul.f32 %v3996_v40, %v3970_v60  ;;  %v1872_v20 = vpop.f32.mrb[69].mxu1  ;;  %v2040_v11 = vpop.f32.mrb[73].mxu0 }
 0x266   :  { %v2083_v18 = vmul.f32 %v2020_v27, %v1872_v20 }
 0x267   :  { %v5343_v21 = vadd.f32 %v2084_v9, %v5295_v6 }
 0x268   :  { %v5346_v28 = vadd.f32 %v2083_v18, %v5298_v14  ;;  %v3973_v19 = vpop.f32.mrb[70].mxu1  ;;  %v4005_v29 = vpop.f32.mrb[74].mxu0 }
 0x269   :  { %v2086_v38 = vmul.f32 %v3999_v30, %v3973_v19  ;;  %v1882_v39 = vpop.f32.mrb[71].mxu1  ;;  %v2050_v43 = vpop.f32.mrb[75].mxu0 }
 0x26a   :  { %v2085_v41 = vmul.f32 %v2030_v56, %v1882_v39 }
 0x26b   :  { %v5349_v51 = vadd.f32 %v2086_v38, %v5301_v46 }
 0x26c   :  { %v5352_v54 = vadd.f32 %v2085_v41, %v5304_v16  ;;  %v3976_v42 = vpop.f32.mrb[72].mxu1  ;;  %v4008_v57 = vpop.f32.mrb[76].mxu0 }
 0x26d   :  { %v2088_v4 = vmul.f32 %v4002_v32, %v3976_v42  ;;  %v1892_v6 = vpop.f32.mrb[73].mxu1  ;;  %v2060_v7 = vpop.f32.mrb[77].mxu0 }
 0x26e   :  { %v2087_v13 = vmul.f32 %v2040_v11, %v1892_v6 }
 0x26f   :  { %v5355_v14 = vadd.f32 %v2088_v4, %v5307_v36 }
 0x270   :  { %v5358_v33 = vadd.f32 %v2087_v13, %v5310_v0  ;;  %v3979_v15 = vpop.f32.mrb[74].mxu1  ;;  %v4011_v24 = vpop.f32.mrb[78].mxu0 }
 0x271   :  { %v2090_v26 = vmul.f32 %v4005_v29, %v3979_v15  ;;  %v1902_v46 = vpop.f32.mrb[75].mxu1  ;;  %v2070_v34 = vpop.f32.mrb[79].mxu0 }
 0x272   :  { %v2089_v35 = vmul.f32 %v2050_v43, %v1902_v46 }
 0x273   :  { %v5361_v16 = vadd.f32 %v2090_v26, %v5313_v47 }
 0x274   :  { %v5364_v31 = vadd.f32 %v2089_v35, %v5316_v1  ;;  %v3982_v37 = vpop.f32.mrb[76].mxu1  ;;  %v4046_v49 = vpop.f32.mrb[80].mxu0 }
 0x275   :  { %v2092_v44 = vmul.f32 %v4008_v57, %v3982_v37  ;;  %v1912_v36 = vpop.f32.mrb[77].mxu1  ;;  %v2332_v61 = vpop.f32.mrb[81].mxu0 }
 0x276   :  { %v2091_v2 = vmul.f32 %v2060_v7, %v1912_v36 }
 0x277   :  { %v5367_v0 = vadd.f32 %v2092_v44, %v5319_v59 }
 0x278   :  { %v5370_v5 = vadd.f32 %v2091_v2, %v5322_v63  ;;  %v3985_v3 = vpop.f32.mrb[78].mxu1  ;;  %v4049_v22 = vpop.f32.mrb[82].mxu0 }
 0x279   :  { %v2094_v62 = vmul.f32 %v4011_v24, %v3985_v3  ;;  %v1922_v47 = vpop.f32.mrb[79].mxu1  ;;  %v2342_v40 = vpop.f32.mrb[83].mxu0 }
 0x27a   :  { %v2093_v23 = vmul.f32 %v2070_v34, %v1922_v47 }
 0x27b   :  { %v5373_v1 = vadd.f32 %v2094_v62, %v5325_v10 }
 0x27c   :  { %v5376_v25 = vadd.f32 %v2093_v23, %v5328_v12  ;;  %v4020_v27 = vpop.f32.mrb[80].mxu1  ;;  %v4052_v50 = vpop.f32.mrb[84].mxu0 }
 0x27d   :  { %v2412_v53 = vmul.f32 %v4046_v49, %v4020_v27  ;;  %v2184_v59 = vpop.f32.mrb[81].mxu1  ;;  %v2352_v30 = vpop.f32.mrb[85].mxu0 }
 0x27e   :  { %v2411_v55 = vmul.f32 %v2332_v61, %v2184_v59 }
 0x27f   :  { %v5379_v63 = vadd.f32 %v2412_v53, %v5331_v8 }
 0x280   :  { %v5382_v45 = vadd.f32 %v2411_v55, %v5334_v17  ;;  %v4023_v56 = vpop.f32.mrb[82].mxu1  ;;  %v4055_v58 = vpop.f32.mrb[86].mxu0 }
 0x281   :  { %v2414_v60 = vmul.f32 %v4049_v22, %v4023_v56  ;;  %v2194_v10 = vpop.f32.mrb[83].mxu1  ;;  %v2362_v32 = vpop.f32.mrb[87].mxu0 }
 0x282   :  { %v2413_v9 = vmul.f32 %v2342_v40, %v2194_v10 }
 0x283   :  { %v5385_v12 = vadd.f32 %v2414_v60, %v5337_v48 }
 0x284   :  { %v5388_v20 = vadd.f32 %v2413_v9, %v5340_v52  ;;  %v4026_v11 = vpop.f32.mrb[84].mxu1  ;;  %v4058_v18 = vpop.f32.mrb[88].mxu0 }
 0x285   :  { %v2416_v19 = vmul.f32 %v4052_v50, %v4026_v11  ;;  %v2204_v8 = vpop.f32.mrb[85].mxu1  ;;  %v2372_v29 = vpop.f32.mrb[89].mxu0 }
 0x286   :  { %v2415_v38 = vmul.f32 %v2352_v30, %v2204_v8 }
 0x287   :  { %v5391_v17 = vadd.f32 %v2416_v19, %v5343_v21 }
 0x288   :  { %v5394_v39 = vadd.f32 %v2415_v38, %v5346_v28  ;;  %v4029_v43 = vpop.f32.mrb[86].mxu1  ;;  %v4061_v41 = vpop.f32.mrb[90].mxu0 }
 0x289   :  { %v2418_v42 = vmul.f32 %v4055_v58, %v4029_v43  ;;  %v2214_v48 = vpop.f32.mrb[87].mxu1  ;;  %v2382_v57 = vpop.f32.mrb[91].mxu0 }
 0x28a   :  { %v2417_v4 = vmul.f32 %v2362_v32, %v2214_v48 }
 0x28b   :  { %v5397_v52 = vadd.f32 %v2418_v42, %v5349_v51 }
 0x28c   :  { %v5400_v6 = vadd.f32 %v2417_v4, %v5352_v54  ;;  %v4032_v7 = vpop.f32.mrb[88].mxu1  ;;  %v4064_v13 = vpop.f32.mrb[92].mxu0 }
 0x28d   :  { %v2420_v15 = vmul.f32 %v4058_v18, %v4032_v7  ;;  %v2224_v21 = vpop.f32.mrb[89].mxu1  ;;  %v2392_v24 = vpop.f32.mrb[93].mxu0 }
 0x28e   :  { %v2419_v26 = vmul.f32 %v2372_v29, %v2224_v21 }
 0x28f   :  { %v5403_v28 = vadd.f32 %v2420_v15, %v5355_v14 }
 0x290   :  { %v5406_v46 = vadd.f32 %v2419_v26, %v5358_v33  ;;  %v4035_v34 = vpop.f32.mrb[90].mxu1  ;;  %v4067_v35 = vpop.f32.mrb[94].mxu0 }
 0x291   :  { %v2422_v37 = vmul.f32 %v4061_v41, %v4035_v34  ;;  %v2234_v51 = vpop.f32.mrb[91].mxu1  ;;  %v2402_v49 = vpop.f32.mrb[95].mxu0 }
 0x292   :  { %v2421_v44 = vmul.f32 %v2382_v57, %v2234_v51 }
 0x293   :  { %v5409_v54 = vadd.f32 %v2422_v37, %v5361_v16 }
 0x294   :  { %v5412_v36 = vadd.f32 %v2421_v44, %v5364_v31  ;;  %v4038_v61 = vpop.f32.mrb[92].mxu1  ;;  %v4102_v2 = vpop.f32.mrb[96].mxu0 }
 0x295   :  { %v2424_v3 = vmul.f32 %v4064_v13, %v4038_v61  ;;  %v2244_v14 = vpop.f32.mrb[93].mxu1  ;;  %v2664_v22 = vpop.f32.mrb[97].mxu0 }
 0x296   :  { %v2423_v62 = vmul.f32 %v2392_v24, %v2244_v14 }
 0x297   :  { %v5415_v33 = vadd.f32 %v2424_v3, %v5367_v0 }
 0x298   :  { %v5418_v47 = vadd.f32 %v2423_v62, %v5370_v5  ;;  %v4041_v40 = vpop.f32.mrb[94].mxu1  ;;  %v4105_v23 = vpop.f32.mrb[98].mxu0 }
 0x299   :  { %v2426_v27 = vmul.f32 %v4067_v35, %v4041_v40  ;;  %v2254_v16 = vpop.f32.mrb[95].mxu1  ;;  %v2674_v50 = vpop.f32.mrb[99].mxu0 }
 0x29a   :  { %v2425_v53 = vmul.f32 %v2402_v49, %v2254_v16 }
 0x29b   :  { %v5421_v31 = vadd.f32 %v2426_v27, %v5373_v1 }
 0x29c   :  { %v5424_v59 = vadd.f32 %v2425_v53, %v5376_v25  ;;  %v4076_v30 = vpop.f32.mrb[96].mxu1  ;;  %v4108_v55 = vpop.f32.mrb[100].mxu0 }
 0x29d   :  { %v2744_v56 = vmul.f32 %v4102_v2, %v4076_v30  ;;  %v2516_v0 = vpop.f32.mrb[97].mxu1  ;;  %v2684_v58 = vpop.f32.mrb[101].mxu0 }
 0x29e   :  { %v2743_v60 = vmul.f32 %v2664_v22, %v2516_v0 }
 0x29f   :  { %v5427_v5 = vadd.f32 %v2744_v56, %v5379_v63 }
 0x2a0   :  { %v5430_v10 = vadd.f32 %v2743_v60, %v5382_v45  ;;  %v4079_v32 = vpop.f32.mrb[98].mxu1  ;;  %v4111_v9 = vpop.f32.mrb[102].mxu0 }
 0x2a1   :  { %v2746_v11 = vmul.f32 %v4105_v23, %v4079_v32  ;;  %v2526_v1 = vpop.f32.mrb[99].mxu1  ;;  %v2694_v18 = vpop.f32.mrb[103].mxu0 }
 0x2a2   :  { %v2745_v19 = vmul.f32 %v2674_v50, %v2526_v1 }
 0x2a3   :  { %v5433_v25 = vadd.f32 %v2746_v11, %v5385_v12 }
 0x2a4   :  { %v5436_v8 = vadd.f32 %v2745_v19, %v5388_v20  ;;  %v4082_v29 = vpop.f32.mrb[100].mxu1  ;;  %v4114_v38 = vpop.f32.mrb[104].mxu0 }
 0x2a5   :  { %v2748_v43 = vmul.f32 %v4108_v55, %v4082_v29  ;;  %v2536_v63 = vpop.f32.mrb[101].mxu1  ;;  %v2704_v41 = vpop.f32.mrb[105].mxu0 }
 0x2a6   :  { %v2747_v42 = vmul.f32 %v2684_v58, %v2536_v63 }
 0x2a7   :  { %v5439_v45 = vadd.f32 %v2748_v43, %v5391_v17 }
 0x2a8   :  { %v5442_v48 = vadd.f32 %v2747_v42, %v5394_v39  ;;  %v4085_v57 = vpop.f32.mrb[102].mxu1  ;;  %v4117_v4 = vpop.f32.mrb[106].mxu0 }
 0x2a9   :  { %v2750_v7 = vmul.f32 %v4111_v9, %v4085_v57  ;;  %v2546_v12 = vpop.f32.mrb[103].mxu1  ;;  %v2714_v13 = vpop.f32.mrb[107].mxu0 }
 0x2aa   :  { %v2749_v15 = vmul.f32 %v2694_v18, %v2546_v12 }
 0x2ab   :  { %v5445_v20 = vadd.f32 %v2750_v7, %v5397_v52 }
 0x2ac   :  { %v5448_v21 = vadd.f32 %v2749_v15, %v5400_v6  ;;  %v4088_v24 = vpop.f32.mrb[104].mxu1  ;;  %v4120_v26 = vpop.f32.mrb[108].mxu0 }
 0x2ad   :  { %v2752_v34 = vmul.f32 %v4114_v38, %v4088_v24  ;;  %v2556_v17 = vpop.f32.mrb[105].mxu1  ;;  %v2724_v35 = vpop.f32.mrb[109].mxu0 }
 0x2ae   :  { %v2751_v37 = vmul.f32 %v2704_v41, %v2556_v17 }
 0x2af   :  { %v5451_v39 = vadd.f32 %v2752_v34, %v5403_v28 }
 0x2b0   :  { %v5454_v51 = vadd.f32 %v2751_v37, %v5406_v46  ;;  %v4091_v49 = vpop.f32.mrb[106].mxu1  ;;  %v4123_v44 = vpop.f32.mrb[110].mxu0 }
 0x2b1   :  { %v2754_v61 = vmul.f32 %v4117_v4, %v4091_v49  ;;  %v2566_v52 = vpop.f32.mrb[107].mxu1  ;;  %v2734_v2 = vpop.f32.mrb[111].mxu0 }
 0x2b2   :  { %v2753_v3 = vmul.f32 %v2714_v13, %v2566_v52 }
 0x2b3   :  { %v5457_v6 = vadd.f32 %v2754_v61, %v5409_v54 }
 0x2b4   :  { %v5460_v14 = vadd.f32 %v2753_v3, %v5412_v36  ;;  %v4094_v22 = vpop.f32.mrb[108].mxu1  ;;  %v4158_v62 = vpop.f32.mrb[112].mxu0 }
 0x2b5   :  { %v2756_v40 = vmul.f32 %v4120_v26, %v4094_v22  ;;  %v2576_v28 = vpop.f32.mrb[109].mxu1  ;;  %v2996_v23 = vpop.f32.mrb[113].mxu0 }
 0x2b6   :  { %v2755_v27 = vmul.f32 %v2724_v35, %v2576_v28 }
 0x2b7   :  { %v5463_v46 = vadd.f32 %v2756_v40, %v5415_v33 }
 0x2b8   :  { %v5466_v16 = vadd.f32 %v2755_v27, %v5418_v47  ;;  %v4097_v50 = vpop.f32.mrb[110].mxu1  ;;  %v4161_v53 = vpop.f32.mrb[114].mxu0 }
 0x2b9   :  { %v2758_v30 = vmul.f32 %v4123_v44, %v4097_v50  ;;  %v2586_v54 = vpop.f32.mrb[111].mxu1  ;;  %v3006_v55 = vpop.f32.mrb[115].mxu0 }
 0x2ba   :  { %v2757_v56 = vmul.f32 %v2734_v2, %v2586_v54 }
 0x2bb   :  { %v5469_v36 = vadd.f32 %v2758_v30, %v5421_v31 }
 0x2bc   :  { %v5472_v0 = vadd.f32 %v2757_v56, %v5424_v59  ;;  %v4132_v58 = vpop.f32.mrb[112].mxu1  ;;  %v4164_v60 = vpop.f32.mrb[116].mxu0 }
 0x2bd   :  { %v3076_v32 = vmul.f32 %v4158_v62, %v4132_v58  ;;  %v2848_v33 = vpop.f32.mrb[113].mxu1  ;;  %v3016_v9 = vpop.f32.mrb[117].mxu0 }
 0x2be   :  { %v3075_v11 = vmul.f32 %v2996_v23, %v2848_v33 }
 0x2bf   :  { %v3092_v47 = vadd.f32 %v3076_v32, %v5427_v5 }
 0x2c0   :  { %v3091_v1 = vadd.f32 %v3075_v11, %v5430_v10  ;;  %v4135_v18 = vpop.f32.mrb[114].mxu1  ;;  %v4167_v19 = vpop.f32.mrb[118].mxu0 }
 0x2c1   :  { %3108 = vst [vmem:[#allocation5 + $0x8] sm:$0xff] %v3092_v47  ;;  %v3078_v29 = vmul.f32 %v4161_v53, %v4135_v18  ;;  %v2858_v38 = vpop.f32.mrb[115].mxu1  ;;  %v3026_v31 = vpop.f32.mrb[119].mxu0 }
 0x2c2   :  { %3107 = vst [vmem:[#allocation5] sm:$0xff] %v3091_v1  ;;  %v3077_v43 = vmul.f32 %v3006_v55, %v2858_v38 }
 0x2c3   :  { %v3094_v59 = vadd.f32 %v3078_v29, %v5433_v25 }
 0x2c4   :  { %v3093_v63 = vadd.f32 %v3077_v43, %v5436_v8  ;;  %v4138_v41 = vpop.f32.mrb[116].mxu1  ;;  %v4170_v42 = vpop.f32.mrb[120].mxu0 }
 0x2c5   :  { %3110 = vst [vmem:[#allocation5 + $0x18] sm:$0xff] %v3094_v59  ;;  %v3080_v57 = vmul.f32 %v4164_v60, %v4138_v41  ;;  %v2868_v4 = vpop.f32.mrb[117].mxu1  ;;  %v3036_v5 = vpop.f32.mrb[121].mxu0 }
 0x2c6   :  { %3109 = vst [vmem:[#allocation5 + $0x10] sm:$0xff] %v3093_v63  ;;  %v3079_v10 = vmul.f32 %v3016_v9, %v2868_v4 }
 0x2c7   :  { %v3096_v7 = vadd.f32 %v3080_v57, %v5439_v45 }
 0x2c8   :  { %v3095_v12 = vadd.f32 %v3079_v10, %v5442_v48  ;;  %v4141_v13 = vpop.f32.mrb[118].mxu1  ;;  %v4173_v15 = vpop.f32.mrb[122].mxu0 }
 0x2c9   :  { %3112 = vst [vmem:[#allocation5 + $0x28] sm:$0xff] %v3096_v7  ;;  %v3082_v24 = vmul.f32 %v4167_v19, %v4141_v13  ;;  %v2878_v26 = vpop.f32.mrb[119].mxu1  ;;  %v3046_v25 = vpop.f32.mrb[123].mxu0 }
 0x2ca   :  { %3111 = vst [vmem:[#allocation5 + $0x20] sm:$0xff] %v3095_v12  ;;  %v3081_v8 = vmul.f32 %v3026_v31, %v2878_v26 }
 0x2cb   :  { %v3098_v34 = vadd.f32 %v3082_v24, %v5445_v20 }
 0x2cc   :  { %v3097_v17 = vadd.f32 %v3081_v8, %v5448_v21  ;;  %v4144_v35 = vpop.f32.mrb[120].mxu1  ;;  %v4176_v37 = vpop.f32.mrb[124].mxu0 }
 0x2cd   :  { %3114 = vst [vmem:[#allocation5 + $0x38] sm:$0xff] %v3098_v34  ;;  %v3084_v49 = vmul.f32 %v4170_v42, %v4144_v35  ;;  %v2888_v44 = vpop.f32.mrb[121].mxu1  ;;  %v3056_v45 = vpop.f32.mrb[125].mxu0 }
 0x2ce   :  { %3113 = vst [vmem:[#allocation5 + $0x30] sm:$0xff] %v3097_v17  ;;  %v3083_v48 = vmul.f32 %v3036_v5, %v2888_v44 }
 0x2cf   :  { %v3100_v61 = vadd.f32 %v3084_v49, %v5451_v39 }
 0x2d0   :  { %v3099_v52 = vadd.f32 %v3083_v48, %v5454_v51  ;;  %v4147_v2 = vpop.f32.mrb[122].mxu1  ;;  %v4179_v3 = vpop.f32.mrb[126].mxu0 }
 0x2d1   :  { %3116 = vst [vmem:[#allocation5 + $0x48] sm:$0xff] %v3100_v61  ;;  %v3086_v22 = vmul.f32 %v4173_v15, %v4147_v2  ;;  %v2898_v62 = vpop.f32.mrb[123].mxu1  ;;  %v3066_v20 = vpop.f32.mrb[127].mxu0 }
 0x2d2   :  { %3115 = vst [vmem:[#allocation5 + $0x40] sm:$0xff] %v3099_v52  ;;  %v3085_v21 = vmul.f32 %v3046_v25, %v2898_v62 }
 0x2d3   :  { %v3102_v40 = vadd.f32 %v3086_v22, %v5457_v6 }
 0x2d4   :  { %v3101_v28 = vadd.f32 %v3085_v21, %v5460_v14  ;;  %v4150_v23 = vpop.f32.mrb[124].mxu1 }
 0x2d5   :  { %3118 = vst [vmem:[#allocation5 + $0x58] sm:$0xff] %v3102_v40  ;;  %v3088_v27 = vmul.f32 %v4176_v37, %v4150_v23  ;;  %v2908_v50 = vpop.f32.mrb[125].mxu1 }
 0x2d6   :  { %3117 = vst [vmem:[#allocation5 + $0x50] sm:$0xff] %v3101_v28  ;;  %v3087_v39 = vmul.f32 %v3056_v45, %v2908_v50 }
 0x2d7   :  { %v3104_v51 = vadd.f32 %v3088_v27, %v5463_v46 }
 0x2d8   :  { %v3103_v53 = vadd.f32 %v3087_v39, %v5466_v16  ;;  %v4153_v30 = vpop.f32.mrb[126].mxu1 }
 0x2d9   :  { %3120 = vst [vmem:[#allocation5 + $0x68] sm:$0xff] %v3104_v51  ;;  %v3090_v54 = vmul.f32 %v4179_v3, %v4153_v30  ;;  %v2918_v55 = vpop.f32.mrb[127].mxu1 }
 0x2da   :  { %3119 = vst [vmem:[#allocation5 + $0x60] sm:$0xff] %v3103_v53  ;;  %v3089_v6 = vmul.f32 %v3066_v20, %v2918_v55 }
 0x2db   :  { %v3106_v14 = vadd.f32 %v3090_v54, %v5469_v36 }
 0x2dc   :  { %v3105_v56 = vadd.f32 %v3089_v6, %v5472_v0 }
 0x2dd   :  { %3122 = vst [vmem:[#allocation5 + $0x78] sm:$0xff] %v3106_v14 }
 0x2de   :  { %3121 = vst [vmem:[#allocation5 + $0x70] sm:$0xff] %v3105_v56 }
 0x2df   :  { %4281 = shalt.err (!%p4278_p12)
}
 0x2e0   :  { %s4282_s21 = scalar_lea.hbm %s5505_s3, 2048 }
 0x2e1   :  { %p4283_p13 = scmp.ne.s32.totalorder %s5505_s3, %s4282_s21  ;;  %p4286_p0 = scmp.lt.u32.totalorder %s4282_s21, %s5505_s3 }
 0x2e3   :  { %p4288_p1 = pnand %p4286_p0, %p4283_p13 }
 0x2e5   :  { %4291 = shalt.err (!%p4288_p1)
}
 0x2e6   :  { %s4304_s26 = smov 128   ;;  %s4305_s27 = smov 8  }
 0x2e7   :  { %3134 = dma.vmem_to_hbm [thread:$0]  %s3129_s17, 2048, %s5505_s3, [#allocation4], %s4304_s26, %s4304_s26, %s4305_s27  }
 0x2e8   :  { %4294 = dma.done.wait [#allocation4], 2048  }
 0x2e9   :  { %4295 = vsyncadd [#allocation4], 4294965248 }
 0x2ea   :  { %3138 = vsyncpa [#allocation3], 1 }
 0x2eb   :  { %3139 = vsyncpa [#allocation4], 1 }

</bundles_post_ra>
